<compile_context>
chip_gen: v5e
topology: v5e:2x2
jax: 0.10.0
libtpu: 0.0.40
codegen_flags: <defaults>
</compile_context>

<pallas_src>
from functools import partial

import jax
import jax.numpy as jnp
from jax import lax
from jax.experimental import pallas as pl
from jax.experimental.pallas import tpu as pltpu


def _cdiv(a, b):
    return -(-a // b)


def _round_up(a, b):
    return _cdiv(a, b) * b


def _pad_gates_rows(w, H, Hp):
    """w: [3H, K] with (r, z, n) gate blocks stacked on axis 0 -> [3Hp, K]."""
    K = w.shape[1]
    w3 = w.reshape(3, H, K)
    w3 = jnp.pad(w3, ((0, 0), (0, Hp - H), (0, 0)))
    return w3.reshape(3 * Hp, K)


def _pad_gates_vec(b, H, Hp):
    b3 = b.reshape(3, H)
    b3 = jnp.pad(b3, ((0, 0), (0, Hp - H)))
    return b3.reshape(3 * Hp)


_VMEM_BUDGET = 44 * 2 ** 20   # per-core block working set; leaves headroom on v7x (64 MiB)


def _choose_geometry(N, L, Hp, use_bf16):
    """Pick (batch tile tn, padded batch Np, time chunk T, padded L, unroll, vmem limit)."""
    Np0 = _round_up(max(N, 1), 8)
    if Np0 <= 128:
        ntiles, tn = 1, Np0
    else:
        ntiles = max(2, _cdiv(Np0, 256))           # >= 2 tiles -> feeds both v7x TensorCores
        tn = _round_up(_cdiv(Np0, ntiles), 8)      # ... with minimal batch padding

    if L < 8:
        T = L                                      # block == full time dim (allowed)
    else:
        t_max = 32 if Hp <= 256 else (16 if Hp <= 512 else 8)
        T = min((t for t in (32, 16, 8) if t <= t_max),
                key=lambda t: (_round_up(L, t), -t))

    gi_item = 2 if use_bf16 else 4
    w_item = 2 if use_bf16 else 4

    def est(T_, tn_):
        Ts = _round_up(T_, 8)
        return (2 * T_ * tn_ * 3 * Hp * gi_item    # gi blocks (double buffered)
                + 2 * Ts * tn_ * 128 * 4           # mask blocks (lane padded to 128)
                + 2 * tn_ * Ts * Hp * 4            # output blocks
                + 2 * tn_ * Hp * 4                 # h0 blocks
                + Hp * 3 * Hp * w_item             # W_hh^T (single buffered)
                + 8 * Hp * 4                       # b_hh_n
                + tn_ * Hp * 4)                    # carried-h scratch

    while est(T, tn) > _VMEM_BUDGET:
        if T > 8:
            T //= 2
        elif tn > 8:
            ntiles += 1
            tn = _round_up(_cdiv(Np0, ntiles), 8)
        else:
            break  # TODO(synk): tile the hidden dim of W_hh for very large H.

    Np = ntiles * tn
    Lp = _round_up(L, T)

    # Full unroll for small gate slabs (amortize grid overhead); unroll=2 for
    # large tn*Hp to limit vreg spill from a fully-unrolled chunk body.
    unroll = True if tn * Hp <= 16384 else 2
    if unroll == 2 and T % 2:
        unroll = True

    vmem_limit = int(min(120 * 2 ** 20, max(32 * 2 ** 20, est(T, tn) * 5 // 4)))
    return tn, Np, T, Lp, unroll, vmem_limit


def _gru_kernel(gi_ref, m_ref, h0_ref, whh_ref, bhn_ref, out_ref, h_scr, *, unroll):
    # Initialize the carried hidden state at the first time-chunk of each
    # batch tile (time is the inner, "arbitrary" grid axis).
    @pl.when(pl.program_id(1) == 0)
    def _():
        h_scr[...] = h0_ref[...].astype(jnp.float32)

    T = gi_ref.shape[0]
    Hp = h_scr.shape[-1]
    f32 = jnp.float32

    whh = whh_ref[...]                                   # (Hp, 3Hp) resident (bf16 or f32)
    bhn = jnp.broadcast_to(bhn_ref[...], h_scr.shape)    # hoisted broadcast (f32)

    def step(t, h):
        h = h * m_ref[t].astype(f32)                     # (tn, Hp) * (tn, 1)
        gi = gi_ref[t].astype(f32)                       # (tn, 3Hp) hoisted projection
        # MXU matmul: narrow (possibly bf16) feed, f32 accumulation.
        gh = jnp.dot(h.astype(whh.dtype), whh, preferred_element_type=f32)
        # gates (r, z, n); b_ih and b_hh_{r,z} are already folded into gi.
        r = jax.nn.sigmoid(gi[:, :Hp] + gh[:, :Hp])
        z = jax.nn.sigmoid(gi[:, Hp:2 * Hp] + gh[:, Hp:2 * Hp])
        n = jnp.tanh(gi[:, 2 * Hp:] + r * (gh[:, 2 * Hp:] + bhn))
        # TODO(synk): optional bf16 sigmoid/tanh inputs on v6e/v7x (bf16 EUP).
        h_new = n + z * (h - n)                          # == (1-z)*n + z*h
        # Batch-major output block (tn, T, Hp): lane-dense store, no post-kernel
        # transpose pass over the full output in HBM.
        out_ref[:, pl.ds(t, 1), :] = h_new[:, None, :].astype(out_ref.dtype)
        return h_new

    if unroll is True:
        # Static time indices -> static (free) output slices.
        h = h_scr[...]
        for t in range(T):
            h = step(t, h)
        h_scr[...] = h
    else:
        h_scr[...] = lax.fori_loop(0, T, step, h_scr[...], unroll=unroll)


@partial(jax.jit, static_argnames=("precision",))
def gru_forward(inputs, params, h=None, is_initial=None, *, precision="bfloat16"):
    """inputs: [N, L, H_in] (PyTorch convention).  Returns (outputs, h_expanded)."""
    if precision not in ("float32", "bfloat16"):
        raise ValueError(f"unknown precision: {precision}")
    N, L, H_in = inputs.shape
    w_ih, w_hh, b_ih, b_hh = params
    H = w_hh.shape[1]

    f32 = jnp.float32
    use_bf16 = precision == "bfloat16"
    mm_dtype = jnp.bfloat16 if use_bf16 else f32

    if h is None:
        h = jnp.zeros((N, H), dtype=f32)
    if is_initial is None:
        is_initial = jnp.zeros((N, L, 1), dtype=f32)
    mask = (1.0 - is_initial.astype(f32)).reshape(N, L, 1)

    # ---- padded / tiled geometry (VMEM-budgeted) ---------------------------
    Hp = _round_up(H, 128)                               # lane-dense gates and output
    tn, Np, T, Lp, unroll, vmem_limit = _choose_geometry(N, L, Hp, use_bf16)

    w_ih = w_ih.astype(f32); w_hh = w_hh.astype(f32)
    b_ih = b_ih.astype(f32); b_hh = b_hh.astype(f32)

    # Per-gate zero padding so the (r, z, n) slices fall on lane-tile
    # boundaries.  Padded hidden columns provably stay zero through the
    # recurrence, so the unpadded results are exact.
    wih_p = _pad_gates_rows(w_ih, H, Hp)                 # [3Hp, H_in]
    whh_p = _pad_gates_rows(w_hh, H, Hp)                 # [3Hp, H]
    whh_p = jnp.pad(whh_p, ((0, 0), (0, Hp - H)))        # [3Hp, Hp]
    bih_p = _pad_gates_vec(b_ih, H, Hp)                  # [3Hp]
    bhh_p = _pad_gates_vec(b_hh, H, Hp)                  # [3Hp]

    # Fold b_ih and the r/z components of b_hh into the hoisted projection;
    # b_hh_n must stay inside the kernel (it is scaled by the reset gate r).
    bhh_r, bhh_z, bhh_n = bhh_p[:Hp], bhh_p[Hp:2 * Hp], bhh_p[2 * Hp:]
    b_fold = bih_p + jnp.concatenate([bhh_r, bhh_z, jnp.zeros((Hp,), f32)])

    # Pad the *small* input/mask before the big projection so XLA emits gi
    # already padded -- no extra full-tensor HBM pad pass on [L, N, 3Hp].
    x_p = jnp.pad(inputs.astype(f32), ((0, Np - N), (0, Lp - L), (0, 0)))
    x_tm = jnp.transpose(x_p, (1, 0, 2))                 # [Lp, Np, H_in] (small)
    # Hoisted input projection for ALL timesteps (M = Lp*Np fills the MXU); the
    # contraction over H_in with free dims (l, n) yields the time-major layout
    # directly, so the large [Lp, Np, 3Hp] activation is never transposed.
    gi_tm = jnp.einsum('lni,gi->lng',
                       x_tm.astype(mm_dtype), wih_p.astype(mm_dtype),
                       preferred_element_type=f32) + b_fold
    gi_tm = gi_tm.astype(mm_dtype)                       # bf16 stream halves HBM traffic

    m_tm = jnp.pad(jnp.transpose(mask, (1, 0, 2)),
                   ((0, Lp - L), (0, Np - N), (0, 0)))   # [Lp, Np, 1]

    h0 = jnp.pad(h.astype(f32), ((0, Np - N), (0, Hp - H)))   # [Np, Hp]
    whh_t = jnp.transpose(whh_p).astype(mm_dtype)        # [Hp, 3Hp]
    bhn = bhh_n.reshape(1, Hp)                           # [1, Hp]

    grid = (Np // tn, Lp // T)
    grid_spec = pltpu.PrefetchScalarGridSpec(
        num_scalar_prefetch=0,
        grid=grid,
        in_specs=[
            pl.BlockSpec((T, tn, 3 * Hp), lambda b, c: (c, b, 0)),   # gi chunk
            pl.BlockSpec((T, tn, 1), lambda b, c: (c, b, 0)),        # mask chunk
            pl.BlockSpec((tn, Hp), lambda b, c: (b, 0)),             # h0 tile
            pl.BlockSpec((Hp, 3 * Hp), lambda b, c: (0, 0),
                         pipeline_mode=pl.Buffered(1)),              # W_hh^T (constant, 1x buffered)
            pl.BlockSpec((1, Hp), lambda b, c: (0, 0)),              # b_hh_n
        ],
        # Batch-major output written straight from the kernel (Hp last dim is
        # lane-dense); eliminates the post-kernel XLA transpose pass.
        out_specs=pl.BlockSpec((tn, T, Hp), lambda b, c: (b, c, 0)),
        scratch_shapes=[pltpu.VMEM((tn, Hp), jnp.float32)],
    )

    out_bm = pl.pallas_call(
        partial(_gru_kernel, unroll=unroll),
        out_shape=jax.ShapeDtypeStruct((Np, Lp, Hp), f32),
        grid_spec=grid_spec,
        compiler_params=pltpu.CompilerParams(
            dimension_semantics=("parallel", "arbitrary"),
            vmem_limit_bytes=vmem_limit),
    )(gi_tm, m_tm, h0, whh_t, bhn)

    outputs = out_bm[:N, :L, :H]                         # already [N, L, H]
    h_final = outputs[:, L - 1, :]                       # final hidden state
    h_expanded = jnp.broadcast_to(h_final[:, None, :], (N, L, H))
    return outputs, h_expanded


def _gru_reference(inputs, params, h=None, is_initial=None):
    """Pure-JAX reference mirroring the PyTorch module exactly."""
    N, L, H_in = inputs.shape
    w_ih, w_hh, b_ih, b_hh = params
    H = w_hh.shape[1]
    if h is None:
        h = jnp.zeros((N, H), dtype=jnp.float32)
    if is_initial is None:
        is_initial = jnp.zeros((N, L, 1), dtype=jnp.float32)
    mask = (1.0 - is_initial.astype(jnp.float32)).reshape(N, L, 1)

    outs = []
    for i in range(L):
        h = h * mask[:, i]
        x = inputs[:, i]
        gi = x @ w_ih.T + b_ih
        gh = h @ w_hh.T + b_hh
        i_r, i_z, i_n = gi[:, :H], gi[:, H:2 * H], gi[:, 2 * H:]
        h_r, h_z, h_n = gh[:, :H], gh[:, H:2 * H], gh[:, 2 * H:]
        r = jax.nn.sigmoid(i_r + h_r)
        z = jax.nn.sigmoid(i_z + h_z)
        n = jnp.tanh(i_n + r * h_n)
        h = (1.0 - z) * n + z * h
        outs.append(h)
    outputs = jnp.stack(outs, axis=1)
    return outputs, jnp.broadcast_to(h[:, None, :], (N, L, H))


def init_gru_params(key, input_size, hidden_size):
    """Deterministic init matching nn.GRUCell param shapes (U(-k, k), k=1/sqrt(H))."""
    k = 1.0 / jnp.sqrt(jnp.array(hidden_size, dtype=jnp.float32))
    k1, k2, k3, k4 = jax.random.split(key, 4)
    w_ih = jax.random.uniform(k1, (3 * hidden_size, input_size), jnp.float32, -k, k)
    w_hh = jax.random.uniform(k2, (3 * hidden_size, hidden_size), jnp.float32, -k, k)
    b_ih = jax.random.uniform(k3, (3 * hidden_size,), jnp.float32, -k, k)
    b_hh = jax.random.uniform(k4, (3 * hidden_size,), jnp.float32, -k, k)
    return w_ih, w_hh, b_ih, b_hh


if __name__ == "__main__":
    N, L, H_in, H = 2, 8, 16, 32
    key = jax.random.PRNGKey(0)
    k_p, k_x, k_m = jax.random.split(key, 3)

    params = init_gru_params(k_p, H_in, H)
    x = jax.random.normal(k_x, (N, L, H_in), dtype=jnp.float32)
    # exercise the masking path: some episode resets mid-sequence
    is_initial = (jax.random.uniform(k_m, (N, L, 1)) < 0.25).astype(jnp.float32)

    ref_out, ref_h = _gru_reference(x, params, h=None, is_initial=is_initial)

    # Exact-precision path (f32 everywhere): strict tolerance.
    out_f32, h_f32 = gru_forward(x, params, h=None, is_initial=is_initial,
                                 precision="float32")
    out_f32 = jax.block_until_ready(out_f32)
    h_f32 = jax.block_until_ready(h_f32)
    assert out_f32.shape == (N, L, H) and h_f32.shape == (N, L, H)
    assert jnp.allclose(out_f32, ref_out, atol=1e-5, rtol=1e-5)
    assert jnp.allclose(h_f32, ref_h, atol=1e-5, rtol=1e-5)

    # Fast path (bf16 matmul feeds + bf16 gi stream, f32 accumulation / gates).
    out_bf16, h_bf16 = gru_forward(x, params, h=None, is_initial=is_initial,
                                   precision="bfloat16")
    out_bf16 = jax.block_until_ready(out_bf16)
    h_bf16 = jax.block_until_ready(h_bf16)
    assert jnp.allclose(out_bf16, ref_out, atol=5e-2, rtol=0.0)
    assert jnp.allclose(h_bf16, ref_h, atol=5e-2, rtol=0.0)

    print("KERNEL_OK")
</pallas_src>

<mosaic_0001>
module attributes {stable_mosaic.version = 11 : i64} {
  func.func @_gru_kernel(%arg0: i32, %arg1: i32, %arg2: memref<8x8x384xf32, #tpu.memory_space<vmem>>, %arg3: memref<8x8x1xf32, #tpu.memory_space<vmem>>, %arg4: memref<8x128xf32, #tpu.memory_space<vmem>>, %arg5: memref<128x384xf32, #tpu.memory_space<vmem>>, %arg6: memref<1x128xf32, #tpu.memory_space<vmem>>, %arg7: memref<8x8x128xf32, #tpu.memory_space<vmem>>, %arg8: memref<8x128xf32, #tpu.memory_space<vmem>>) attributes {dimension_semantics = [#tpu.dimension_semantics<parallel>, #tpu.dimension_semantics<arbitrary>], iteration_bounds = array<i64: 1, 1>, scalar_prefetch = 0 : i64, scratch_operands = 1 : i64, tpu.core_type = #tpu.core_type<tc>, window_params = [{transform_indices = @transform_0, window_bounds = array<i64: 8, 8, 384>}, {transform_indices = @transform_1, window_bounds = array<i64: 8, 8, 1>}, {transform_indices = @transform_2, window_bounds = array<i64: 8, 128>}, {pipeline_mode = #tpu.pipeline_mode<synchronous>, transform_indices = @transform_3, window_bounds = array<i64: 128, 384>}, {pipeline_mode = #tpu.pipeline_mode<synchronous>, transform_indices = @transform_4, window_bounds = array<i64: 1, 128>}, {transform_indices = @transform_5, window_bounds = array<i64: 8, 8, 128>}]} {
    %c0_i32 = arith.constant 0 : i32
    %0 = arith.cmpi eq, %arg1, %c0_i32 : i32
    %1 = arith.extui %0 : i1 to i32
    %c0_i32_0 = arith.constant 0 : i32
    %2 = arith.cmpi ne, %1, %c0_i32_0 : i32
    scf.if %2 {
      %c0_96 = arith.constant 0 : index
      %c0_97 = arith.constant 0 : index
      %281 = vector.load %arg4[%c0_96, %c0_97] : memref<8x128xf32, #tpu.memory_space<vmem>>, vector<8x128xf32>
      %c0_98 = arith.constant 0 : index
      %c0_99 = arith.constant 0 : index
      %282 = vector.load %arg8[%c0_98, %c0_99] : memref<8x128xf32, #tpu.memory_space<vmem>>, vector<8x128xf32>
      tpu.vector_store %arg8[%c0_98, %c0_99], %281 {strides = array<i32>} : memref<8x128xf32, #tpu.memory_space<vmem>>, vector<8x128xf32>,
    } else {
    }
    %c0 = arith.constant 0 : index
    %c0_1 = arith.constant 0 : index
    %3 = vector.load %arg5[%c0, %c0_1] : memref<128x384xf32, #tpu.memory_space<vmem>>, vector<128x384xf32>
    %c0_2 = arith.constant 0 : index
    %c0_3 = arith.constant 0 : index
    %4 = vector.load %arg6[%c0_2, %c0_3] : memref<1x128xf32, #tpu.memory_space<vmem>>, vector<1x128xf32>
    %5 = vector.shape_cast %4 : vector<1x128xf32> to vector<1x128xf32>
    %6 = vector.broadcast %5 : vector<1x128xf32> to vector<8x128xf32>
    %c0_4 = arith.constant 0 : index
    %c0_5 = arith.constant 0 : index
    %7 = vector.load %arg8[%c0_4, %c0_5] : memref<8x128xf32, #tpu.memory_space<vmem>>, vector<8x128xf32>
    %c0_6 = arith.constant 0 : index
    %c0_7 = arith.constant 0 : index
    %c0_8 = arith.constant 0 : index
    %8 = vector.load %arg3[%c0_6, %c0_7, %c0_8] : memref<8x8x1xf32, #tpu.memory_space<vmem>>, vector<1x8x1xf32>
    %9 = vector.shape_cast %8 : vector<1x8x1xf32> to vector<8x1xf32>
    %10 = vector.broadcast %9 : vector<8x1xf32> to vector<8x128xf32>
    %11 = arith.mulf %7, %10 : vector<8x128xf32>
    %c0_9 = arith.constant 0 : index
    %c0_10 = arith.constant 0 : index
    %c0_11 = arith.constant 0 : index
    %12 = vector.load %arg2[%c0_9, %c0_10, %c0_11] : memref<8x8x384xf32, #tpu.memory_space<vmem>>, vector<1x8x384xf32>
    %13 = vector.shape_cast %12 : vector<1x8x384xf32> to vector<8x384xf32>
    %cst = arith.constant dense<0.000000e+00> : vector<8x384xf32>
    %14 = tpu.matmul %11, %3, %cst {dimension_numbers = #tpu.dot_dimension_numbers<[1], [0], [0], [1], [0, 0, 1, 1], [], []>} : vector<8x128xf32>, vector<128x384xf32>, vector<8x384xf32> -> vector<8x384xf32>
    %15 = vector.extract_strided_slice %13 {offsets = [0, 0], sizes = [8, 128], strides = [1, 1]} : vector<8x384xf32> to vector<8x128xf32>
    %16 = vector.extract_strided_slice %14 {offsets = [0, 0], sizes = [8, 128], strides = [1, 1]} : vector<8x384xf32> to vector<8x128xf32>
    %17 = arith.addf %15, %16 : vector<8x128xf32>
    %18 = arith.negf %17 : vector<8x128xf32>
    %19 = math.exp %18 : vector<8x128xf32>
    %cst_12 = arith.constant 1.000000e+00 : f32
    %20 = vector.broadcast %cst_12 : f32 to vector<8x128xf32>
    %21 = arith.addf %20, %19 : vector<8x128xf32>
    %22 = arith.divf %20, %21 : vector<8x128xf32>
    %23 = vector.extract_strided_slice %13 {offsets = [0, 128], sizes = [8, 128], strides = [1, 1]} : vector<8x384xf32> to vector<8x128xf32>
    %24 = vector.extract_strided_slice %14 {offsets = [0, 128], sizes = [8, 128], strides = [1, 1]} : vector<8x384xf32> to vector<8x128xf32>
    %25 = arith.addf %23, %24 : vector<8x128xf32>
    %26 = arith.negf %25 : vector<8x128xf32>
    %27 = math.exp %26 : vector<8x128xf32>
    %cst_13 = arith.constant 1.000000e+00 : f32
    %28 = vector.broadcast %cst_13 : f32 to vector<8x128xf32>
    %29 = arith.addf %28, %27 : vector<8x128xf32>
    %30 = arith.divf %28, %29 : vector<8x128xf32>
    %31 = vector.extract_strided_slice %13 {offsets = [0, 256], sizes = [8, 128], strides = [1, 1]} : vector<8x384xf32> to vector<8x128xf32>
    %32 = vector.extract_strided_slice %14 {offsets = [0, 256], sizes = [8, 128], strides = [1, 1]} : vector<8x384xf32> to vector<8x128xf32>
    %33 = arith.addf %32, %6 : vector<8x128xf32>
    %34 = arith.mulf %22, %33 : vector<8x128xf32>
    %35 = arith.addf %31, %34 : vector<8x128xf32>
    %36 = math.tanh %35 : vector<8x128xf32>
    %37 = arith.subf %11, %36 : vector<8x128xf32>
    %38 = arith.mulf %30, %37 : vector<8x128xf32>
    %39 = arith.addf %36, %38 : vector<8x128xf32>
    %40 = vector.shape_cast %39 : vector<8x128xf32> to vector<8x1x128xf32>
    %c0_14 = arith.constant 0 : index
    %c0_15 = arith.constant 0 : index
    %c0_16 = arith.constant 0 : index
    %41 = vector.load %arg7[%c0_14, %c0_15, %c0_16] : memref<8x8x128xf32, #tpu.memory_space<vmem>>, vector<8x1x128xf32>
    tpu.vector_store %arg7[%c0_14, %c0_15, %c0_16], %40 {strides = array<i32>} : memref<8x8x128xf32, #tpu.memory_space<vmem>>, vector<8x1x128xf32>,
    %c1 = arith.constant 1 : index
    %c0_17 = arith.constant 0 : index
    %c0_18 = arith.constant 0 : index
    %42 = vector.load %arg3[%c1, %c0_17, %c0_18] : memref<8x8x1xf32, #tpu.memory_space<vmem>>, vector<1x8x1xf32>
    %43 = vector.shape_cast %42 : vector<1x8x1xf32> to vector<8x1xf32>
    %44 = vector.broadcast %43 : vector<8x1xf32> to vector<8x128xf32>
    %45 = arith.mulf %39, %44 : vector<8x128xf32>
    %c1_19 = arith.constant 1 : index
    %c0_20 = arith.constant 0 : index
    %c0_21 = arith.constant 0 : index
    %46 = vector.load %arg2[%c1_19, %c0_20, %c0_21] : memref<8x8x384xf32, #tpu.memory_space<vmem>>, vector<1x8x384xf32>
    %47 = vector.shape_cast %46 : vector<1x8x384xf32> to vector<8x384xf32>
    %cst_22 = arith.constant dense<0.000000e+00> : vector<8x384xf32>
    %48 = tpu.matmul %45, %3, %cst_22 {dimension_numbers = #tpu.dot_dimension_numbers<[1], [0], [0], [1], [0, 0, 1, 1], [], []>} : vector<8x128xf32>, vector<128x384xf32>, vector<8x384xf32> -> vector<8x384xf32>
    %49 = vector.extract_strided_slice %47 {offsets = [0, 0], sizes = [8, 128], strides = [1, 1]} : vector<8x384xf32> to vector<8x128xf32>
    %50 = vector.extract_strided_slice %48 {offsets = [0, 0], sizes = [8, 128], strides = [1, 1]} : vector<8x384xf32> to vector<8x128xf32>
    %51 = arith.addf %49, %50 : vector<8x128xf32>
    %52 = arith.negf %51 : vector<8x128xf32>
    %53 = math.exp %52 : vector<8x128xf32>
    %cst_23 = arith.constant 1.000000e+00 : f32
    %54 = vector.broadcast %cst_23 : f32 to vector<8x128xf32>
    %55 = arith.addf %54, %53 : vector<8x128xf32>
    %56 = arith.divf %54, %55 : vector<8x128xf32>
    %57 = vector.extract_strided_slice %47 {offsets = [0, 128], sizes = [8, 128], strides = [1, 1]} : vector<8x384xf32> to vector<8x128xf32>
    %58 = vector.extract_strided_slice %48 {offsets = [0, 128], sizes = [8, 128], strides = [1, 1]} : vector<8x384xf32> to vector<8x128xf32>
    %59 = arith.addf %57, %58 : vector<8x128xf32>
    %60 = arith.negf %59 : vector<8x128xf32>
    %61 = math.exp %60 : vector<8x128xf32>
    %cst_24 = arith.constant 1.000000e+00 : f32
    %62 = vector.broadcast %cst_24 : f32 to vector<8x128xf32>
    %63 = arith.addf %62, %61 : vector<8x128xf32>
    %64 = arith.divf %62, %63 : vector<8x128xf32>
    %65 = vector.extract_strided_slice %47 {offsets = [0, 256], sizes = [8, 128], strides = [1, 1]} : vector<8x384xf32> to vector<8x128xf32>
    %66 = vector.extract_strided_slice %48 {offsets = [0, 256], sizes = [8, 128], strides = [1, 1]} : vector<8x384xf32> to vector<8x128xf32>
    %67 = arith.addf %66, %6 : vector<8x128xf32>
    %68 = arith.mulf %56, %67 : vector<8x128xf32>
    %69 = arith.addf %65, %68 : vector<8x128xf32>
    %70 = math.tanh %69 : vector<8x128xf32>
    %71 = arith.subf %45, %70 : vector<8x128xf32>
    %72 = arith.mulf %64, %71 : vector<8x128xf32>
    %73 = arith.addf %70, %72 : vector<8x128xf32>
    %74 = vector.shape_cast %73 : vector<8x128xf32> to vector<8x1x128xf32>
    %c0_25 = arith.constant 0 : index
    %c1_26 = arith.constant 1 : index
    %c0_27 = arith.constant 0 : index
    %75 = vector.load %arg7[%c0_25, %c1_26, %c0_27] : memref<8x8x128xf32, #tpu.memory_space<vmem>>, vector<8x1x128xf32>
    tpu.vector_store %arg7[%c0_25, %c1_26, %c0_27], %74 {strides = array<i32>} : memref<8x8x128xf32, #tpu.memory_space<vmem>>, vector<8x1x128xf32>,
    %c2 = arith.constant 2 : index
    %c0_28 = arith.constant 0 : index
    %c0_29 = arith.constant 0 : index
    %76 = vector.load %arg3[%c2, %c0_28, %c0_29] : memref<8x8x1xf32, #tpu.memory_space<vmem>>, vector<1x8x1xf32>
    %77 = vector.shape_cast %76 : vector<1x8x1xf32> to vector<8x1xf32>
    %78 = vector.broadcast %77 : vector<8x1xf32> to vector<8x128xf32>
    %79 = arith.mulf %73, %78 : vector<8x128xf32>
    %c2_30 = arith.constant 2 : index
    %c0_31 = arith.constant 0 : index
    %c0_32 = arith.constant 0 : index
    %80 = vector.load %arg2[%c2_30, %c0_31, %c0_32] : memref<8x8x384xf32, #tpu.memory_space<vmem>>, vector<1x8x384xf32>
    %81 = vector.shape_cast %80 : vector<1x8x384xf32> to vector<8x384xf32>
    %cst_33 = arith.constant dense<0.000000e+00> : vector<8x384xf32>
    %82 = tpu.matmul %79, %3, %cst_33 {dimension_numbers = #tpu.dot_dimension_numbers<[1], [0], [0], [1], [0, 0, 1, 1], [], []>} : vector<8x128xf32>, vector<128x384xf32>, vector<8x384xf32> -> vector<8x384xf32>
    %83 = vector.extract_strided_slice %81 {offsets = [0, 0], sizes = [8, 128], strides = [1, 1]} : vector<8x384xf32> to vector<8x128xf32>
    %84 = vector.extract_strided_slice %82 {offsets = [0, 0], sizes = [8, 128], strides = [1, 1]} : vector<8x384xf32> to vector<8x128xf32>
    %85 = arith.addf %83, %84 : vector<8x128xf32>
    %86 = arith.negf %85 : vector<8x128xf32>
    %87 = math.exp %86 : vector<8x128xf32>
    %cst_34 = arith.constant 1.000000e+00 : f32
    %88 = vector.broadcast %cst_34 : f32 to vector<8x128xf32>
    %89 = arith.addf %88, %87 : vector<8x128xf32>
    %90 = arith.divf %88, %89 : vector<8x128xf32>
    %91 = vector.extract_strided_slice %81 {offsets = [0, 128], sizes = [8, 128], strides = [1, 1]} : vector<8x384xf32> to vector<8x128xf32>
    %92 = vector.extract_strided_slice %82 {offsets = [0, 128], sizes = [8, 128], strides = [1, 1]} : vector<8x384xf32> to vector<8x128xf32>
    %93 = arith.addf %91, %92 : vector<8x128xf32>
    %94 = arith.negf %93 : vector<8x128xf32>
    %95 = math.exp %94 : vector<8x128xf32>
    %cst_35 = arith.constant 1.000000e+00 : f32
    %96 = vector.broadcast %cst_35 : f32 to vector<8x128xf32>
    %97 = arith.addf %96, %95 : vector<8x128xf32>
    %98 = arith.divf %96, %97 : vector<8x128xf32>
    %99 = vector.extract_strided_slice %81 {offsets = [0, 256], sizes = [8, 128], strides = [1, 1]} : vector<8x384xf32> to vector<8x128xf32>
    %100 = vector.extract_strided_slice %82 {offsets = [0, 256], sizes = [8, 128], strides = [1, 1]} : vector<8x384xf32> to vector<8x128xf32>
    %101 = arith.addf %100, %6 : vector<8x128xf32>
    %102 = arith.mulf %90, %101 : vector<8x128xf32>
    %103 = arith.addf %99, %102 : vector<8x128xf32>
    %104 = math.tanh %103 : vector<8x128xf32>
    %105 = arith.subf %79, %104 : vector<8x128xf32>
    %106 = arith.mulf %98, %105 : vector<8x128xf32>
    %107 = arith.addf %104, %106 : vector<8x128xf32>
    %108 = vector.shape_cast %107 : vector<8x128xf32> to vector<8x1x128xf32>
    %c0_36 = arith.constant 0 : index
    %c2_37 = arith.constant 2 : index
    %c0_38 = arith.constant 0 : index
    %109 = vector.load %arg7[%c0_36, %c2_37, %c0_38] : memref<8x8x128xf32, #tpu.memory_space<vmem>>, vector<8x1x128xf32>
    tpu.vector_store %arg7[%c0_36, %c2_37, %c0_38], %108 {strides = array<i32>} : memref<8x8x128xf32, #tpu.memory_space<vmem>>, vector<8x1x128xf32>,
    %c3 = arith.constant 3 : index
    %c0_39 = arith.constant 0 : index
    %c0_40 = arith.constant 0 : index
    %110 = vector.load %arg3[%c3, %c0_39, %c0_40] : memref<8x8x1xf32, #tpu.memory_space<vmem>>, vector<1x8x1xf32>
    %111 = vector.shape_cast %110 : vector<1x8x1xf32> to vector<8x1xf32>
    %112 = vector.broadcast %111 : vector<8x1xf32> to vector<8x128xf32>
    %113 = arith.mulf %107, %112 : vector<8x128xf32>
    %c3_41 = arith.constant 3 : index
    %c0_42 = arith.constant 0 : index
    %c0_43 = arith.constant 0 : index
    %114 = vector.load %arg2[%c3_41, %c0_42, %c0_43] : memref<8x8x384xf32, #tpu.memory_space<vmem>>, vector<1x8x384xf32>
    %115 = vector.shape_cast %114 : vector<1x8x384xf32> to vector<8x384xf32>
    %cst_44 = arith.constant dense<0.000000e+00> : vector<8x384xf32>
    %116 = tpu.matmul %113, %3, %cst_44 {dimension_numbers = #tpu.dot_dimension_numbers<[1], [0], [0], [1], [0, 0, 1, 1], [], []>} : vector<8x128xf32>, vector<128x384xf32>, vector<8x384xf32> -> vector<8x384xf32>
    %117 = vector.extract_strided_slice %115 {offsets = [0, 0], sizes = [8, 128], strides = [1, 1]} : vector<8x384xf32> to vector<8x128xf32>
    %118 = vector.extract_strided_slice %116 {offsets = [0, 0], sizes = [8, 128], strides = [1, 1]} : vector<8x384xf32> to vector<8x128xf32>
    %119 = arith.addf %117, %118 : vector<8x128xf32>
    %120 = arith.negf %119 : vector<8x128xf32>
    %121 = math.exp %120 : vector<8x128xf32>
    %cst_45 = arith.constant 1.000000e+00 : f32
    %122 = vector.broadcast %cst_45 : f32 to vector<8x128xf32>
    %123 = arith.addf %122, %121 : vector<8x128xf32>
    %124 = arith.divf %122, %123 : vector<8x128xf32>
    %125 = vector.extract_strided_slice %115 {offsets = [0, 128], sizes = [8, 128], strides = [1, 1]} : vector<8x384xf32> to vector<8x128xf32>
    %126 = vector.extract_strided_slice %116 {offsets = [0, 128], sizes = [8, 128], strides = [1, 1]} : vector<8x384xf32> to vector<8x128xf32>
    %127 = arith.addf %125, %126 : vector<8x128xf32>
    %128 = arith.negf %127 : vector<8x128xf32>
    %129 = math.exp %128 : vector<8x128xf32>
    %cst_46 = arith.constant 1.000000e+00 : f32
    %130 = vector.broadcast %cst_46 : f32 to vector<8x128xf32>
    %131 = arith.addf %130, %129 : vector<8x128xf32>
    %132 = arith.divf %130, %131 : vector<8x128xf32>
    %133 = vector.extract_strided_slice %115 {offsets = [0, 256], sizes = [8, 128], strides = [1, 1]} : vector<8x384xf32> to vector<8x128xf32>
    %134 = vector.extract_strided_slice %116 {offsets = [0, 256], sizes = [8, 128], strides = [1, 1]} : vector<8x384xf32> to vector<8x128xf32>
    %135 = arith.addf %134, %6 : vector<8x128xf32>
    %136 = arith.mulf %124, %135 : vector<8x128xf32>
    %137 = arith.addf %133, %136 : vector<8x128xf32>
    %138 = math.tanh %137 : vector<8x128xf32>
    %139 = arith.subf %113, %138 : vector<8x128xf32>
    %140 = arith.mulf %132, %139 : vector<8x128xf32>
    %141 = arith.addf %138, %140 : vector<8x128xf32>
    %142 = vector.shape_cast %141 : vector<8x128xf32> to vector<8x1x128xf32>
    %c0_47 = arith.constant 0 : index
    %c3_48 = arith.constant 3 : index
    %c0_49 = arith.constant 0 : index
    %143 = vector.load %arg7[%c0_47, %c3_48, %c0_49] : memref<8x8x128xf32, #tpu.memory_space<vmem>>, vector<8x1x128xf32>
    tpu.vector_store %arg7[%c0_47, %c3_48, %c0_49], %142 {strides = array<i32>} : memref<8x8x128xf32, #tpu.memory_space<vmem>>, vector<8x1x128xf32>,
    %c4 = arith.constant 4 : index
    %c0_50 = arith.constant 0 : index
    %c0_51 = arith.constant 0 : index
    %144 = vector.load %arg3[%c4, %c0_50, %c0_51] : memref<8x8x1xf32, #tpu.memory_space<vmem>>, vector<1x8x1xf32>
    %145 = vector.shape_cast %144 : vector<1x8x1xf32> to vector<8x1xf32>
    %146 = vector.broadcast %145 : vector<8x1xf32> to vector<8x128xf32>
    %147 = arith.mulf %141, %146 : vector<8x128xf32>
    %c4_52 = arith.constant 4 : index
    %c0_53 = arith.constant 0 : index
    %c0_54 = arith.constant 0 : index
    %148 = vector.load %arg2[%c4_52, %c0_53, %c0_54] : memref<8x8x384xf32, #tpu.memory_space<vmem>>, vector<1x8x384xf32>
    %149 = vector.shape_cast %148 : vector<1x8x384xf32> to vector<8x384xf32>
    %cst_55 = arith.constant dense<0.000000e+00> : vector<8x384xf32>
    %150 = tpu.matmul %147, %3, %cst_55 {dimension_numbers = #tpu.dot_dimension_numbers<[1], [0], [0], [1], [0, 0, 1, 1], [], []>} : vector<8x128xf32>, vector<128x384xf32>, vector<8x384xf32> -> vector<8x384xf32>
    %151 = vector.extract_strided_slice %149 {offsets = [0, 0], sizes = [8, 128], strides = [1, 1]} : vector<8x384xf32> to vector<8x128xf32>
    %152 = vector.extract_strided_slice %150 {offsets = [0, 0], sizes = [8, 128], strides = [1, 1]} : vector<8x384xf32> to vector<8x128xf32>
    %153 = arith.addf %151, %152 : vector<8x128xf32>
    %154 = arith.negf %153 : vector<8x128xf32>
    %155 = math.exp %154 : vector<8x128xf32>
    %cst_56 = arith.constant 1.000000e+00 : f32
    %156 = vector.broadcast %cst_56 : f32 to vector<8x128xf32>
    %157 = arith.addf %156, %155 : vector<8x128xf32>
    %158 = arith.divf %156, %157 : vector<8x128xf32>
    %159 = vector.extract_strided_slice %149 {offsets = [0, 128], sizes = [8, 128], strides = [1, 1]} : vector<8x384xf32> to vector<8x128xf32>
    %160 = vector.extract_strided_slice %150 {offsets = [0, 128], sizes = [8, 128], strides = [1, 1]} : vector<8x384xf32> to vector<8x128xf32>
    %161 = arith.addf %159, %160 : vector<8x128xf32>
    %162 = arith.negf %161 : vector<8x128xf32>
    %163 = math.exp %162 : vector<8x128xf32>
    %cst_57 = arith.constant 1.000000e+00 : f32
    %164 = vector.broadcast %cst_57 : f32 to vector<8x128xf32>
    %165 = arith.addf %164, %163 : vector<8x128xf32>
    %166 = arith.divf %164, %165 : vector<8x128xf32>
    %167 = vector.extract_strided_slice %149 {offsets = [0, 256], sizes = [8, 128], strides = [1, 1]} : vector<8x384xf32> to vector<8x128xf32>
    %168 = vector.extract_strided_slice %150 {offsets = [0, 256], sizes = [8, 128], strides = [1, 1]} : vector<8x384xf32> to vector<8x128xf32>
    %169 = arith.addf %168, %6 : vector<8x128xf32>
    %170 = arith.mulf %158, %169 : vector<8x128xf32>
    %171 = arith.addf %167, %170 : vector<8x128xf32>
    %172 = math.tanh %171 : vector<8x128xf32>
    %173 = arith.subf %147, %172 : vector<8x128xf32>
    %174 = arith.mulf %166, %173 : vector<8x128xf32>
    %175 = arith.addf %172, %174 : vector<8x128xf32>
    %176 = vector.shape_cast %175 : vector<8x128xf32> to vector<8x1x128xf32>
    %c0_58 = arith.constant 0 : index
    %c4_59 = arith.constant 4 : index
    %c0_60 = arith.constant 0 : index
    %177 = vector.load %arg7[%c0_58, %c4_59, %c0_60] : memref<8x8x128xf32, #tpu.memory_space<vmem>>, vector<8x1x128xf32>
    tpu.vector_store %arg7[%c0_58, %c4_59, %c0_60], %176 {strides = array<i32>} : memref<8x8x128xf32, #tpu.memory_space<vmem>>, vector<8x1x128xf32>,
    %c5 = arith.constant 5 : index
    %c0_61 = arith.constant 0 : index
    %c0_62 = arith.constant 0 : index
    %178 = vector.load %arg3[%c5, %c0_61, %c0_62] : memref<8x8x1xf32, #tpu.memory_space<vmem>>, vector<1x8x1xf32>
    %179 = vector.shape_cast %178 : vector<1x8x1xf32> to vector<8x1xf32>
    %180 = vector.broadcast %179 : vector<8x1xf32> to vector<8x128xf32>
    %181 = arith.mulf %175, %180 : vector<8x128xf32>
    %c5_63 = arith.constant 5 : index
    %c0_64 = arith.constant 0 : index
    %c0_65 = arith.constant 0 : index
    %182 = vector.load %arg2[%c5_63, %c0_64, %c0_65] : memref<8x8x384xf32, #tpu.memory_space<vmem>>, vector<1x8x384xf32>
    %183 = vector.shape_cast %182 : vector<1x8x384xf32> to vector<8x384xf32>
    %cst_66 = arith.constant dense<0.000000e+00> : vector<8x384xf32>
    %184 = tpu.matmul %181, %3, %cst_66 {dimension_numbers = #tpu.dot_dimension_numbers<[1], [0], [0], [1], [0, 0, 1, 1], [], []>} : vector<8x128xf32>, vector<128x384xf32>, vector<8x384xf32> -> vector<8x384xf32>
    %185 = vector.extract_strided_slice %183 {offsets = [0, 0], sizes = [8, 128], strides = [1, 1]} : vector<8x384xf32> to vector<8x128xf32>
    %186 = vector.extract_strided_slice %184 {offsets = [0, 0], sizes = [8, 128], strides = [1, 1]} : vector<8x384xf32> to vector<8x128xf32>
    %187 = arith.addf %185, %186 : vector<8x128xf32>
    %188 = arith.negf %187 : vector<8x128xf32>
    %189 = math.exp %188 : vector<8x128xf32>
    %cst_67 = arith.constant 1.000000e+00 : f32
    %190 = vector.broadcast %cst_67 : f32 to vector<8x128xf32>
    %191 = arith.addf %190, %189 : vector<8x128xf32>
    %192 = arith.divf %190, %191 : vector<8x128xf32>
    %193 = vector.extract_strided_slice %183 {offsets = [0, 128], sizes = [8, 128], strides = [1, 1]} : vector<8x384xf32> to vector<8x128xf32>
    %194 = vector.extract_strided_slice %184 {offsets = [0, 128], sizes = [8, 128], strides = [1, 1]} : vector<8x384xf32> to vector<8x128xf32>
    %195 = arith.addf %193, %194 : vector<8x128xf32>
    %196 = arith.negf %195 : vector<8x128xf32>
    %197 = math.exp %196 : vector<8x128xf32>
    %cst_68 = arith.constant 1.000000e+00 : f32
    %198 = vector.broadcast %cst_68 : f32 to vector<8x128xf32>
    %199 = arith.addf %198, %197 : vector<8x128xf32>
    %200 = arith.divf %198, %199 : vector<8x128xf32>
    %201 = vector.extract_strided_slice %183 {offsets = [0, 256], sizes = [8, 128], strides = [1, 1]} : vector<8x384xf32> to vector<8x128xf32>
    %202 = vector.extract_strided_slice %184 {offsets = [0, 256], sizes = [8, 128], strides = [1, 1]} : vector<8x384xf32> to vector<8x128xf32>
    %203 = arith.addf %202, %6 : vector<8x128xf32>
    %204 = arith.mulf %192, %203 : vector<8x128xf32>
    %205 = arith.addf %201, %204 : vector<8x128xf32>
    %206 = math.tanh %205 : vector<8x128xf32>
    %207 = arith.subf %181, %206 : vector<8x128xf32>
    %208 = arith.mulf %200, %207 : vector<8x128xf32>
    %209 = arith.addf %206, %208 : vector<8x128xf32>
    %210 = vector.shape_cast %209 : vector<8x128xf32> to vector<8x1x128xf32>
    %c0_69 = arith.constant 0 : index
    %c5_70 = arith.constant 5 : index
    %c0_71 = arith.constant 0 : index
    %211 = vector.load %arg7[%c0_69, %c5_70, %c0_71] : memref<8x8x128xf32, #tpu.memory_space<vmem>>, vector<8x1x128xf32>
    tpu.vector_store %arg7[%c0_69, %c5_70, %c0_71], %210 {strides = array<i32>} : memref<8x8x128xf32, #tpu.memory_space<vmem>>, vector<8x1x128xf32>,
    %c6 = arith.constant 6 : index
    %c0_72 = arith.constant 0 : index
    %c0_73 = arith.constant 0 : index
    %212 = vector.load %arg3[%c6, %c0_72, %c0_73] : memref<8x8x1xf32, #tpu.memory_space<vmem>>, vector<1x8x1xf32>
    %213 = vector.shape_cast %212 : vector<1x8x1xf32> to vector<8x1xf32>
    %214 = vector.broadcast %213 : vector<8x1xf32> to vector<8x128xf32>
    %215 = arith.mulf %209, %214 : vector<8x128xf32>
    %c6_74 = arith.constant 6 : index
    %c0_75 = arith.constant 0 : index
    %c0_76 = arith.constant 0 : index
    %216 = vector.load %arg2[%c6_74, %c0_75, %c0_76] : memref<8x8x384xf32, #tpu.memory_space<vmem>>, vector<1x8x384xf32>
    %217 = vector.shape_cast %216 : vector<1x8x384xf32> to vector<8x384xf32>
    %cst_77 = arith.constant dense<0.000000e+00> : vector<8x384xf32>
    %218 = tpu.matmul %215, %3, %cst_77 {dimension_numbers = #tpu.dot_dimension_numbers<[1], [0], [0], [1], [0, 0, 1, 1], [], []>} : vector<8x128xf32>, vector<128x384xf32>, vector<8x384xf32> -> vector<8x384xf32>
    %219 = vector.extract_strided_slice %217 {offsets = [0, 0], sizes = [8, 128], strides = [1, 1]} : vector<8x384xf32> to vector<8x128xf32>
    %220 = vector.extract_strided_slice %218 {offsets = [0, 0], sizes = [8, 128], strides = [1, 1]} : vector<8x384xf32> to vector<8x128xf32>
    %221 = arith.addf %219, %220 : vector<8x128xf32>
    %222 = arith.negf %221 : vector<8x128xf32>
    %223 = math.exp %222 : vector<8x128xf32>
    %cst_78 = arith.constant 1.000000e+00 : f32
    %224 = vector.broadcast %cst_78 : f32 to vector<8x128xf32>
    %225 = arith.addf %224, %223 : vector<8x128xf32>
    %226 = arith.divf %224, %225 : vector<8x128xf32>
    %227 = vector.extract_strided_slice %217 {offsets = [0, 128], sizes = [8, 128], strides = [1, 1]} : vector<8x384xf32> to vector<8x128xf32>
    %228 = vector.extract_strided_slice %218 {offsets = [0, 128], sizes = [8, 128], strides = [1, 1]} : vector<8x384xf32> to vector<8x128xf32>
    %229 = arith.addf %227, %228 : vector<8x128xf32>
    %230 = arith.negf %229 : vector<8x128xf32>
    %231 = math.exp %230 : vector<8x128xf32>
    %cst_79 = arith.constant 1.000000e+00 : f32
    %232 = vector.broadcast %cst_79 : f32 to vector<8x128xf32>
    %233 = arith.addf %232, %231 : vector<8x128xf32>
    %234 = arith.divf %232, %233 : vector<8x128xf32>
    %235 = vector.extract_strided_slice %217 {offsets = [0, 256], sizes = [8, 128], strides = [1, 1]} : vector<8x384xf32> to vector<8x128xf32>
    %236 = vector.extract_strided_slice %218 {offsets = [0, 256], sizes = [8, 128], strides = [1, 1]} : vector<8x384xf32> to vector<8x128xf32>
    %237 = arith.addf %236, %6 : vector<8x128xf32>
    %238 = arith.mulf %226, %237 : vector<8x128xf32>
    %239 = arith.addf %235, %238 : vector<8x128xf32>
    %240 = math.tanh %239 : vector<8x128xf32>
    %241 = arith.subf %215, %240 : vector<8x128xf32>
    %242 = arith.mulf %234, %241 : vector<8x128xf32>
    %243 = arith.addf %240, %242 : vector<8x128xf32>
    %244 = vector.shape_cast %243 : vector<8x128xf32> to vector<8x1x128xf32>
    %c0_80 = arith.constant 0 : index
    %c6_81 = arith.constant 6 : index
    %c0_82 = arith.constant 0 : index
    %245 = vector.load %arg7[%c0_80, %c6_81, %c0_82] : memref<8x8x128xf32, #tpu.memory_space<vmem>>, vector<8x1x128xf32>
    tpu.vector_store %arg7[%c0_80, %c6_81, %c0_82], %244 {strides = array<i32>} : memref<8x8x128xf32, #tpu.memory_space<vmem>>, vector<8x1x128xf32>,
    %c7 = arith.constant 7 : index
    %c0_83 = arith.constant 0 : index
    %c0_84 = arith.constant 0 : index
    %246 = vector.load %arg3[%c7, %c0_83, %c0_84] : memref<8x8x1xf32, #tpu.memory_space<vmem>>, vector<1x8x1xf32>
    %247 = vector.shape_cast %246 : vector<1x8x1xf32> to vector<8x1xf32>
    %248 = vector.broadcast %247 : vector<8x1xf32> to vector<8x128xf32>
    %249 = arith.mulf %243, %248 : vector<8x128xf32>
    %c7_85 = arith.constant 7 : index
    %c0_86 = arith.constant 0 : index
    %c0_87 = arith.constant 0 : index
    %250 = vector.load %arg2[%c7_85, %c0_86, %c0_87] : memref<8x8x384xf32, #tpu.memory_space<vmem>>, vector<1x8x384xf32>
    %251 = vector.shape_cast %250 : vector<1x8x384xf32> to vector<8x384xf32>
    %cst_88 = arith.constant dense<0.000000e+00> : vector<8x384xf32>
    %252 = tpu.matmul %249, %3, %cst_88 {dimension_numbers = #tpu.dot_dimension_numbers<[1], [0], [0], [1], [0, 0, 1, 1], [], []>} : vector<8x128xf32>, vector<128x384xf32>, vector<8x384xf32> -> vector<8x384xf32>
    %253 = vector.extract_strided_slice %251 {offsets = [0, 0], sizes = [8, 128], strides = [1, 1]} : vector<8x384xf32> to vector<8x128xf32>
    %254 = vector.extract_strided_slice %252 {offsets = [0, 0], sizes = [8, 128], strides = [1, 1]} : vector<8x384xf32> to vector<8x128xf32>
    %255 = arith.addf %253, %254 : vector<8x128xf32>
    %256 = arith.negf %255 : vector<8x128xf32>
    %257 = math.exp %256 : vector<8x128xf32>
    %cst_89 = arith.constant 1.000000e+00 : f32
    %258 = vector.broadcast %cst_89 : f32 to vector<8x128xf32>
    %259 = arith.addf %258, %257 : vector<8x128xf32>
    %260 = arith.divf %258, %259 : vector<8x128xf32>
    %261 = vector.extract_strided_slice %251 {offsets = [0, 128], sizes = [8, 128], strides = [1, 1]} : vector<8x384xf32> to vector<8x128xf32>
    %262 = vector.extract_strided_slice %252 {offsets = [0, 128], sizes = [8, 128], strides = [1, 1]} : vector<8x384xf32> to vector<8x128xf32>
    %263 = arith.addf %261, %262 : vector<8x128xf32>
    %264 = arith.negf %263 : vector<8x128xf32>
    %265 = math.exp %264 : vector<8x128xf32>
    %cst_90 = arith.constant 1.000000e+00 : f32
    %266 = vector.broadcast %cst_90 : f32 to vector<8x128xf32>
    %267 = arith.addf %266, %265 : vector<8x128xf32>
    %268 = arith.divf %266, %267 : vector<8x128xf32>
    %269 = vector.extract_strided_slice %251 {offsets = [0, 256], sizes = [8, 128], strides = [1, 1]} : vector<8x384xf32> to vector<8x128xf32>
    %270 = vector.extract_strided_slice %252 {offsets = [0, 256], sizes = [8, 128], strides = [1, 1]} : vector<8x384xf32> to vector<8x128xf32>
    %271 = arith.addf %270, %6 : vector<8x128xf32>
    %272 = arith.mulf %260, %271 : vector<8x128xf32>
    %273 = arith.addf %269, %272 : vector<8x128xf32>
    %274 = math.tanh %273 : vector<8x128xf32>
    %275 = arith.subf %249, %274 : vector<8x128xf32>
    %276 = arith.mulf %268, %275 : vector<8x128xf32>
    %277 = arith.addf %274, %276 : vector<8x128xf32>
    %278 = vector.shape_cast %277 : vector<8x128xf32> to vector<8x1x128xf32>
    %c0_91 = arith.constant 0 : index
    %c7_92 = arith.constant 7 : index
    %c0_93 = arith.constant 0 : index
    %279 = vector.load %arg7[%c0_91, %c7_92, %c0_93] : memref<8x8x128xf32, #tpu.memory_space<vmem>>, vector<8x1x128xf32>
    tpu.vector_store %arg7[%c0_91, %c7_92, %c0_93], %278 {strides = array<i32>} : memref<8x8x128xf32, #tpu.memory_space<vmem>>, vector<8x1x128xf32>,
    %c0_94 = arith.constant 0 : index
    %c0_95 = arith.constant 0 : index
    %280 = vector.load %arg8[%c0_94, %c0_95] : memref<8x128xf32, #tpu.memory_space<vmem>>, vector<8x128xf32>
    tpu.vector_store %arg8[%c0_94, %c0_95], %277 {strides = array<i32>} : memref<8x128xf32, #tpu.memory_space<vmem>>, vector<8x128xf32>,
    return
  }
  func.func @transform_0(%arg0: i32, %arg1: i32) -> (i32, i32, i32) {
    %c0_i32 = arith.constant 0 : i32
    %c0_i32_0 = arith.constant 0 : i32
    return %arg1, %arg0, %c0_i32 : i32, i32, i32
  }
  func.func @transform_1(%arg0: i32, %arg1: i32) -> (i32, i32, i32) {
    %c0_i32 = arith.constant 0 : i32
    %c0_i32_0 = arith.constant 0 : i32
    return %arg1, %arg0, %c0_i32 : i32, i32, i32
  }
  func.func @transform_2(%arg0: i32, %arg1: i32) -> (i32, i32) {
    %c0_i32 = arith.constant 0 : i32
    %c0_i32_0 = arith.constant 0 : i32
    return %arg0, %c0_i32 : i32, i32
  }
  func.func @transform_3(%arg0: i32, %arg1: i32) -> (i32, i32) {
    %c0_i32 = arith.constant 0 : i32
    %c0_i32_0 = arith.constant 0 : i32
    %c0_i32_1 = arith.constant 0 : i32
    return %c0_i32, %c0_i32_0 : i32, i32
  }
  func.func @transform_4(%arg0: i32, %arg1: i32) -> (i32, i32) {
    %c0_i32 = arith.constant 0 : i32
    %c0_i32_0 = arith.constant 0 : i32
    %c0_i32_1 = arith.constant 0 : i32
    return %c0_i32, %c0_i32_0 : i32, i32
  }
  func.func @transform_5(%arg0: i32, %arg1: i32) -> (i32, i32, i32) {
    %c0_i32 = arith.constant 0 : i32
    %c0_i32_0 = arith.constant 0 : i32
    return %arg0, %arg1, %c0_i32 : i32, i32, i32
  }
}

</mosaic_0001>

<bundles_post_ra>
// kernel: sub.1
= control target key start
LH: loop header
LB: loop body
LE: loop exit
PB: predicated region body
PF: predicated region fallthrough
CT: control target
= control target key end

     0   :  { %s56_s0 = inlined_call_operand.vmem [shape: f32[2,8,1], index: 0, kind: input, shape index: {}]   ;;  %s57_s1 = inlined_call_operand.vmem [shape: f32[2,8,1], index: 1, kind: input, shape index: {}]   ;;  %s58_s2 = inlined_call_operand.vmem [shape: f32[2,8,1], index: 2, kind: output, shape index: {}]  }
   0x1   :  { %v3_v0 = vld [vmem:[%s56_s0] sm:$0x1]  ;;  %v20_v2 = vld [vmem:[%s56_s0 + $0x1] sm:$0x1] }
   0x2   :  { %v4_v1 = vld [vmem:[%s57_s1] sm:$0x1]  ;;  %v21_v4 = vld [vmem:[%s57_s1 + $0x1] sm:$0x1] }
   0x3   :  { %v7_v3 = vsub.f32 %v3_v0, %v4_v1  ;;  %v16_v5 = vsub.f32 %v20_v2, %v21_v4 }
   0x5   :  { %9 = vst [vmem:[%s58_s2] sm:$0x1] %v7_v3 }
   0x6   :  { %22 = vst [vmem:[%s58_s2 + $0x1] sm:$0x1] %v16_v5 }

// kernel: gru_forward.1
= control target key start
LH: loop header
LB: loop body
LE: loop exit
PB: predicated region body
PF: predicated region fallthrough
CT: control target
= control target key end

     0   :  { %v1396_v0 = vmov 0   ;;  %s2642_s1 = inlined_call_operand.vmem [shape: f32[8,8,1], index: 1, kind: input, shape index: {}]   ;;  %s2643_s3 = inlined_call_operand.vmem [shape: f32[128,384], index: 3, kind: input, shape index: {}]   ;;  %s2644_s2 = inlined_call_operand.vmem [shape: f32[8,128], index: 2, kind: input, shape index: {}]   ;;  %s2645_s4 = inlined_call_operand.vmem [shape: f32[1,128], index: 4, kind: input, shape index: {}]   ;;  %s2646_s0 = inlined_call_operand.vmem [shape: f32[8,8,384], index: 0, kind: input, shape index: {}]   ;;  %s2647_s5 = inlined_call_operand.vmem [shape: f32[8,8,128], index: 5, kind: output, shape index: {}]  }
   0x1   :  { %1263 = vset.pattern.permute.xlu0 %v1396_v0  ;;  %v79_v1 = vld [vmem:[%s2642_s1] sm:$0xff]  ;;  %1264 = vset.pattern.permute.xlu1 %v1396_v0  ;;  %v1433_v2 = vld [vmem:[%s2643_s3 + $0x168] sm:$0xff]  ;;  %v1438_v3 = vld [vmem:[%s2643_s3 + $0x170] sm:$0xff] }
   0x2   :  { %82 = vperm.xlu0 %1263, %v79_v1   ;;  %v1443_v4 = vld [vmem:[%s2643_s3 + $0x178] sm:$0xff]  ;;  %1265 = vset.pattern.permute.xlu2 %v1396_v0  ;;  %v1450_v5 = vld [vmem:[%s2643_s3 + $0x150] sm:$0xff]  ;;  %v1460_v7 = vld [vmem:[%s2643_s3 + $0x160] sm:$0xff] }
   0x3   :  { %89 = vmatpush.msra.mxu0 %v1433_v2  ;;  %109 = vmatpush.msra.mxu1 %v1438_v3  ;;  %v1455_v6 = vld [vmem:[%s2643_s3 + $0x158] sm:$0xff]  ;;  %v1471_v9 = vld [vmem:[%s2643_s3 + $0x140] sm:$0xff]  ;;  %v1479_v10 = vld [vmem:[%s2643_s3 + $0x148] sm:$0xff] }
   0x4   :  { %129 = vmatpush.msra.mxu2 %v1443_v4  ;;  %v1466_v8 = vld [vmem:[%s2643_s3 + $0x138] sm:$0xff]  ;;  %231 = vmatpush.msra.mxu3 %v1433_v2  ;;  %v1485_v11 = vld [vmem:[%s2643_s3 + $0x120] sm:$0xff]  ;;  %v1490_v12 = vld [vmem:[%s2643_s3 + $0x128] sm:$0xff] }
   0x5   :  { %90 = vmatpush.msra.mxu0 %v1450_v5  ;;  %110 = vmatpush.msra.mxu1 %v1455_v6  ;;  %v1220_v13 = vld [vmem:[%s2642_s1 + $0x8] sm:$0xff]  ;;  %v1501_v14 = vld [vmem:[%s2643_s3 + $0x130] sm:$0xff]  ;;  %v1520_v17 = vld [vmem:[%s2643_s3 + $0x118] sm:$0xff] }
   0x6   :  { %130 = vmatpush.msra.mxu2 %v1460_v7  ;;  %232 = vmatpush.msra.mxu3 %v1450_v5  ;;  %v1507_v15 = vld [vmem:[%s2643_s3 + $0x108] sm:$0xff]  ;;  %v1512_v16 = vld [vmem:[%s2643_s3 + $0x110] sm:$0xff]  ;;  %v1531_v19 = vld [vmem:[%s2643_s3 + $0xf8] sm:$0xff] }
   0x7   :  { %91 = vmatpush.msra.mxu0 %v1466_v8  ;;  %111 = vmatpush.msra.mxu1 %v1471_v9  ;;  %v1526_v18 = vld [vmem:[%s2643_s3 + $0xf0] sm:$0xff]  ;;  %v1538_v20 = vld [vmem:[%s2643_s3 + $0x100] sm:$0xff]  ;;  %v1544_v21 = vld [vmem:[%s2643_s3 + $0xd8] sm:$0xff] }
   0x8   :  { %131 = vmatpush.msra.mxu2 %v1479_v10  ;;  %233 = vmatpush.msra.mxu3 %v1466_v8  ;;  %v1549_v22 = vld [vmem:[%s2643_s3 + $0xe0] sm:$0xff]  ;;  %v1557_v23 = vld [vmem:[%s2643_s3 + $0xe8] sm:$0xff]  ;;  %v1250_v26 = vld [vmem:[%s2642_s1 + $0x30] sm:$0xff] }
   0x9   :  { %92 = vmatpush.msra.mxu0 %v1485_v11  ;;  %112 = vmatpush.msra.mxu1 %v1490_v12  ;;  %v1563_v24 = vld [vmem:[%s2643_s3 + $0xc0] sm:$0xff]  ;;  %v1568_v25 = vld [vmem:[%s2643_s3 + $0xc8] sm:$0xff]  ;;  %v1579_v27 = vld [vmem:[%s2643_s3 + $0xd0] sm:$0xff] }
   0xa   :  { %223 = vperm.xlu0 %1263, %v1220_v13   ;;  %132 = vmatpush.msra.mxu2 %v1501_v14  ;;  %v1585_v28 = vld [vmem:[%s2643_s3 + $0xa8] sm:$0xff]  ;;  %v1590_v29 = vld [vmem:[%s2643_s3 + $0xb0] sm:$0xff]  ;;  %v1598_v30 = vld [vmem:[%s2643_s3 + $0xb8] sm:$0xff] }
   0xb   :  { %93 = vmatpush.msra.mxu0 %v1507_v15  ;;  %113 = vmatpush.msra.mxu1 %v1512_v16  ;;  %v1604_v31 = vld [vmem:[%s2643_s3 + $0x90] sm:$0xff]  ;;  %v1609_v32 = vld [vmem:[%s2643_s3 + $0x98] sm:$0xff]  ;;  %v1616_v33 = vld [vmem:[%s2643_s3 + $0xa0] sm:$0xff] }
   0xc   :  { %133 = vmatpush.msra.mxu2 %v1520_v17  ;;  %234 = vmatpush.msra.mxu3 %v1485_v11  ;;  %v1622_v34 = vld [vmem:[%s2643_s3 + $0x78] sm:$0xff]  ;;  %v1627_v35 = vld [vmem:[%s2643_s3 + $0x80] sm:$0xff]  ;;  %v1635_v36 = vld [vmem:[%s2643_s3 + $0x88] sm:$0xff] }
   0xd   :  { %94 = vmatpush.msra.mxu0 %v1526_v18  ;;  %114 = vmatpush.msra.mxu1 %v1531_v19  ;;  %v1641_v37 = vld [vmem:[%s2643_s3 + $0x60] sm:$0xff]  ;;  %v1646_v38 = vld [vmem:[%s2643_s3 + $0x68] sm:$0xff]  ;;  %v1654_v39 = vld [vmem:[%s2643_s3 + $0x70] sm:$0xff] }
   0xe   :  { %134 = vmatpush.msra.mxu2 %v1538_v20  ;;  %235 = vmatpush.msra.mxu3 %v1507_v15  ;;  %v1660_v40 = vld [vmem:[%s2643_s3 + $0x48] sm:$0xff]  ;;  %v1665_v41 = vld [vmem:[%s2643_s3 + $0x50] sm:$0xff]  ;;  %v1673_v42 = vld [vmem:[%s2643_s3 + $0x58] sm:$0xff] }
   0xf   :  { %95 = vmatpush.msra.mxu0 %v1544_v21  ;;  %115 = vmatpush.msra.mxu1 %v1549_v22  ;;  %v1679_v43 = vld [vmem:[%s2643_s3 + $0x30] sm:$0xff]  ;;  %v1684_v44 = vld [vmem:[%s2643_s3 + $0x38] sm:$0xff]  ;;  %v1692_v45 = vld [vmem:[%s2643_s3 + $0x40] sm:$0xff] }
  0x10   :  { %135 = vmatpush.msra.mxu2 %v1557_v23  ;;  %236 = vmatpush.msra.mxu3 %v1526_v18  ;;  %v1698_v46 = vld [vmem:[%s2643_s3 + $0x18] sm:$0xff]  ;;  %v1703_v47 = vld [vmem:[%s2643_s3 + $0x20] sm:$0xff]  ;;  %v1711_v48 = vld [vmem:[%s2643_s3 + $0x28] sm:$0xff] }
  0x11   :  { %96 = vmatpush.msra.mxu0 %v1563_v24  ;;  %116 = vmatpush.msra.mxu1 %v1568_v25  ;;  %2665 = vst [vmem:[#allocation3_spill] sm:$0xff] %v1698_v46  ;;  %v1724_v49 = vld [vmem:[%s2643_s3] sm:$0xff]  ;;  %v1729_v50 = vld [vmem:[%s2643_s3 + $0x8] sm:$0xff]  ;;  %v1734_v51 = vld [vmem:[%s2643_s3 + $0x10] sm:$0xff] }
  0x12   :  { %933 = vperm.xlu0 %1263, %v1250_v26   ;;  %136 = vmatpush.msra.mxu2 %v1579_v27  ;;  %2666 = vst [vmem:[#allocation4_spill] sm:$0xff] %v1703_v47  ;;  %v24_v52 = vld [vmem:[%s2644_s2] sm:$0xff]  ;;  %v87_v56 = vld [vmem:[%s2646_s0 + $0x8] sm:$0xff] }
  0x13   :  { %97 = vmatpush.msra.mxu0 %v1585_v28  ;;  %117 = vmatpush.msra.mxu1 %v1590_v29  ;;  %2667 = vst [vmem:[#allocation5_spill] sm:$0xff] %v1711_v48  ;;  %v86_v55 = vld [vmem:[%s2646_s0] sm:$0xff] }
  0x14   :  { %137 = vmatpush.msra.mxu2 %v1598_v30  ;;  %237 = vmatpush.msra.mxu3 %v1544_v21  ;;  %2668 = vst [vmem:[#allocation6_spill] sm:$0xff] %v1724_v49 }
  0x15   :  { %98 = vmatpush.msra.mxu0 %v1604_v31  ;;  %118 = vmatpush.msra.mxu1 %v1609_v32  ;;  %2669 = vst [vmem:[#allocation7_spill] sm:$0xff] %v1729_v50 }
  0x16   :  { %138 = vmatpush.msra.mxu2 %v1616_v33  ;;  %238 = vmatpush.msra.mxu3 %v1563_v24  ;;  %2670 = vst [vmem:[#allocation8_spill] sm:$0xff] %v1734_v51 }
  0x17   :  { %99 = vmatpush.msra.mxu0 %v1622_v34  ;;  %119 = vmatpush.msra.mxu1 %v1627_v35 }
  0x18   :  { %139 = vmatpush.msra.mxu2 %v1635_v36  ;;  %239 = vmatpush.msra.mxu3 %v1585_v28 }
  0x19   :  { %100 = vmatpush.msra.mxu0 %v1641_v37  ;;  %120 = vmatpush.msra.mxu1 %v1646_v38 }
  0x1a   :  { %140 = vmatpush.msra.mxu2 %v1654_v39  ;;  %240 = vmatpush.msra.mxu3 %v1604_v31 }
  0x1b   :  { %101 = vmatpush.msra.mxu0 %v1660_v40  ;;  %121 = vmatpush.msra.mxu1 %v1665_v41 }
  0x1c   :  { %141 = vmatpush.msra.mxu2 %v1673_v42  ;;  %241 = vmatpush.msra.mxu3 %v1622_v34 }
  0x1d   :  { %102 = vmatpush.msra.mxu0 %v1679_v43  ;;  %122 = vmatpush.msra.mxu1 %v1684_v44 }
  0x1e   :  { %142 = vmatpush.msra.mxu2 %v1692_v45  ;;  %242 = vmatpush.msra.mxu3 %v1641_v37 }
  0x1f   :  { %103 = vmatpush.msra.mxu0 %v1698_v46  ;;  %123 = vmatpush.msra.mxu1 %v1703_v47 }
  0x20   :  { %143 = vmatpush.msra.mxu2 %v1711_v48  ;;  %243 = vmatpush.msra.mxu3 %v1660_v40 }
  0x21   :  { %104 = vmatpush.msra.mxu0 %v1724_v49  ;;  %124 = vmatpush.msra.mxu1 %v1729_v50 }
  0x22   :  { %244 = vmatpush.msra.mxu3 %v1679_v43  ;;  %144 = vmatpush.msra.mxu2 %v1734_v51 }
  0x23   :  { %251 = vmatpush.msrb.mxu0 %v1438_v3  ;;  %271 = vmatpush.msrb.mxu1 %v1443_v4 }
  0x24   :  { %245 = vmatpush.msra.mxu3 %v1698_v46  ;;  %373 = vmatpush.msrb.mxu2 %v1433_v2 }
  0x25   :  { %252 = vmatpush.msrb.mxu0 %v1455_v6  ;;  %272 = vmatpush.msrb.mxu1 %v1460_v7 }
  0x26   :  { %246 = vmatpush.msra.mxu3 %v1724_v49  ;;  %374 = vmatpush.msrb.mxu2 %v1450_v5 }
  0x27   :  { %253 = vmatpush.msrb.mxu0 %v1471_v9  ;;  %273 = vmatpush.msrb.mxu1 %v1479_v10 }
  0x28   :  { %393 = vmatpush.msrb.mxu3 %v1438_v3  ;;  %375 = vmatpush.msrb.mxu2 %v1466_v8 }
  0x29   :  { %254 = vmatpush.msrb.mxu0 %v1490_v12  ;;  %274 = vmatpush.msrb.mxu1 %v1501_v14 }
  0x2a   :  { %394 = vmatpush.msrb.mxu3 %v1455_v6  ;;  %376 = vmatpush.msrb.mxu2 %v1485_v11 }
  0x2b   :  { %255 = vmatpush.msrb.mxu0 %v1512_v16  ;;  %275 = vmatpush.msrb.mxu1 %v1520_v17 }
  0x2c   :  { %395 = vmatpush.msrb.mxu3 %v1471_v9  ;;  %377 = vmatpush.msrb.mxu2 %v1507_v15 }
  0x2d   :  { %256 = vmatpush.msrb.mxu0 %v1531_v19  ;;  %276 = vmatpush.msrb.mxu1 %v1538_v20 }
  0x2e   :  { %396 = vmatpush.msrb.mxu3 %v1490_v12  ;;  %378 = vmatpush.msrb.mxu2 %v1526_v18 }
  0x2f   :  { %257 = vmatpush.msrb.mxu0 %v1549_v22  ;;  %277 = vmatpush.msrb.mxu1 %v1557_v23 }
  0x30   :  { %397 = vmatpush.msrb.mxu3 %v1512_v16  ;;  %379 = vmatpush.msrb.mxu2 %v1544_v21 }
  0x31   :  { %258 = vmatpush.msrb.mxu0 %v1568_v25  ;;  %278 = vmatpush.msrb.mxu1 %v1579_v27 }
  0x32   :  { %398 = vmatpush.msrb.mxu3 %v1531_v19  ;;  %380 = vmatpush.msrb.mxu2 %v1563_v24 }
  0x33   :  { %259 = vmatpush.msrb.mxu0 %v1590_v29  ;;  %279 = vmatpush.msrb.mxu1 %v1598_v30 }
  0x34   :  { %399 = vmatpush.msrb.mxu3 %v1549_v22  ;;  %381 = vmatpush.msrb.mxu2 %v1585_v28 }
  0x35   :  { %260 = vmatpush.msrb.mxu0 %v1609_v32  ;;  %280 = vmatpush.msrb.mxu1 %v1616_v33 }
  0x36   :  { %400 = vmatpush.msrb.mxu3 %v1568_v25  ;;  %382 = vmatpush.msrb.mxu2 %v1604_v31 }
  0x37   :  { %261 = vmatpush.msrb.mxu0 %v1627_v35  ;;  %281 = vmatpush.msrb.mxu1 %v1635_v36 }
  0x38   :  { %401 = vmatpush.msrb.mxu3 %v1590_v29  ;;  %383 = vmatpush.msrb.mxu2 %v1622_v34 }
  0x39   :  { %262 = vmatpush.msrb.mxu0 %v1646_v38  ;;  %282 = vmatpush.msrb.mxu1 %v1654_v39 }
  0x3a   :  { %402 = vmatpush.msrb.mxu3 %v1609_v32  ;;  %384 = vmatpush.msrb.mxu2 %v1641_v37 }
  0x3b   :  { %263 = vmatpush.msrb.mxu0 %v1665_v41  ;;  %283 = vmatpush.msrb.mxu1 %v1673_v42 }
  0x3c   :  { %403 = vmatpush.msrb.mxu3 %v1627_v35  ;;  %385 = vmatpush.msrb.mxu2 %v1660_v40 }
  0x3d   :  { %264 = vmatpush.msrb.mxu0 %v1684_v44  ;;  %284 = vmatpush.msrb.mxu1 %v1692_v45 }
  0x3e   :  { %404 = vmatpush.msrb.mxu3 %v1646_v38  ;;  %386 = vmatpush.msrb.mxu2 %v1679_v43 }
  0x3f   :  { %265 = vmatpush.msrb.mxu0 %v1703_v47  ;;  %285 = vmatpush.msrb.mxu1 %v1711_v48 }
  0x40   :  { %405 = vmatpush.msrb.mxu3 %v1665_v41  ;;  %387 = vmatpush.msrb.mxu2 %v1698_v46 }
  0x41   :  { %266 = vmatpush.msrb.mxu0 %v1729_v50  ;;  %286 = vmatpush.msrb.mxu1 %v1734_v51 }
  0x42   :  { %406 = vmatpush.msrb.mxu3 %v1684_v44  ;;  %388 = vmatpush.msrb.mxu2 %v1724_v49 }
  0x44   :  { %407 = vmatpush.msrb.mxu3 %v1703_v47 }
  0x46   :  { %408 = vmatpush.msrb.mxu3 %v1729_v50 }
  0x74   :  { %v83_v53 = vpop.permute.xlu0 %82 }
  0x75   :  { %v1801_v54 = vmul.f32 %v83_v53, %v24_v52 }
  0x77   :  { %105 = vmatmul.f32.vlgmr.msra.gmra.mxu0 %v1801_v54  ;;  %125 = vmatmul.f32.vlgmr.msra.gmra.mxu1 %v1801_v54 }
  0x78   :  { %145 = vmatmul.f32.vlgmr.msra.gmra.mxu2 %v1801_v54  ;;  %413 = vmatpush.msra.mxu0 %v1443_v4 }
  0x79   :  { %515 = vmatpush.msra.mxu1 %v1433_v2  ;;  %535 = vmatpush.msra.mxu2 %v1438_v3 }
  0x7a   :  { %414 = vmatpush.msra.mxu0 %v1460_v7 }
  0x7b   :  { %516 = vmatpush.msra.mxu1 %v1450_v5  ;;  %536 = vmatpush.msra.mxu2 %v1455_v6 }
  0x7c   :  { %415 = vmatpush.msra.mxu0 %v1479_v10 }
  0x7d   :  { %517 = vmatpush.msra.mxu1 %v1466_v8  ;;  %537 = vmatpush.msra.mxu2 %v1471_v9 }
  0x7e   :  { %416 = vmatpush.msra.mxu0 %v1501_v14 }
  0x7f   :  { %518 = vmatpush.msra.mxu1 %v1485_v11  ;;  %538 = vmatpush.msra.mxu2 %v1490_v12 }
  0x80   :  { %417 = vmatpush.msra.mxu0 %v1520_v17 }
  0x81   :  { %519 = vmatpush.msra.mxu1 %v1507_v15  ;;  %539 = vmatpush.msra.mxu2 %v1512_v16 }
  0x82   :  { %418 = vmatpush.msra.mxu0 %v1538_v20 }
  0x83   :  { %520 = vmatpush.msra.mxu1 %v1526_v18  ;;  %540 = vmatpush.msra.mxu2 %v1531_v19 }
  0x84   :  { %419 = vmatpush.msra.mxu0 %v1557_v23 }
  0x85   :  { %521 = vmatpush.msra.mxu1 %v1544_v21  ;;  %541 = vmatpush.msra.mxu2 %v1549_v22 }
  0x86   :  { %420 = vmatpush.msra.mxu0 %v1579_v27 }
  0x87   :  { %522 = vmatpush.msra.mxu1 %v1563_v24  ;;  %542 = vmatpush.msra.mxu2 %v1568_v25 }
  0x88   :  { %421 = vmatpush.msra.mxu0 %v1598_v30 }
  0x89   :  { %523 = vmatpush.msra.mxu1 %v1585_v28  ;;  %543 = vmatpush.msra.mxu2 %v1590_v29 }
  0x8a   :  { %422 = vmatpush.msra.mxu0 %v1616_v33 }
  0x8b   :  { %524 = vmatpush.msra.mxu1 %v1604_v31  ;;  %544 = vmatpush.msra.mxu2 %v1609_v32 }
  0x8c   :  { %423 = vmatpush.msra.mxu0 %v1635_v36 }
  0x8d   :  { %525 = vmatpush.msra.mxu1 %v1622_v34  ;;  %545 = vmatpush.msra.mxu2 %v1627_v35 }
  0x8e   :  { %424 = vmatpush.msra.mxu0 %v1654_v39 }
  0x8f   :  { %526 = vmatpush.msra.mxu1 %v1641_v37  ;;  %546 = vmatpush.msra.mxu2 %v1646_v38 }
  0x90   :  { %425 = vmatpush.msra.mxu0 %v1673_v42 }
  0x91   :  { %527 = vmatpush.msra.mxu1 %v1660_v40  ;;  %547 = vmatpush.msra.mxu2 %v1665_v41 }
  0x92   :  { %426 = vmatpush.msra.mxu0 %v1692_v45 }
  0x93   :  { %528 = vmatpush.msra.mxu1 %v1679_v43  ;;  %548 = vmatpush.msra.mxu2 %v1684_v44 }
  0x94   :  { %427 = vmatpush.msra.mxu0 %v1711_v48 }
  0x95   :  { %529 = vmatpush.msra.mxu1 %v1698_v46  ;;  %549 = vmatpush.msra.mxu2 %v1703_v47 }
  0x96   :  { %428 = vmatpush.msra.mxu0 %v1734_v51 }
  0x97   :  { %530 = vmatpush.msra.mxu1 %v1724_v49  ;;  %550 = vmatpush.msra.mxu2 %v1729_v50 }
  0xf4   :  { %v106_v57 = vpop.f32.mrf.mxu0  ;;  %v126_v58 = vpop.f32.mrf.mxu1 }
  0xf5   :  { %v149_v59 = vadd.f32 %v106_v57, %v86_v55  ;;  %v169_v60 = vadd.f32 %v126_v58, %v87_v56  ;;  %v1226_v55 = vld [vmem:[%s2642_s1 + $0x10] sm:$0xff]  ;;  %v1872_v56 = vld [vmem:[%s2645_s4] ss:$0 sm:$0xff] }
  0xf6   :  { %2671 = vst [vmem:[#allocation9_spill] sm:$0xff] %v1872_v56  ;;  %365 = vperm.xlu1 %1264, %v1226_v55  }
  0xf7   :  { %v1218_v61 = vmul.f32 -1.442695, %v149_v59  ;;  %v1219_v62 = vmul.f32 -1.442695, %v169_v60 }
  0xf9   :  { %1267 = vpow2.f32 %v1218_v61 }
  0xfa   :  { %1269 = vpow2.f32 %v1219_v62 }
  0xfb   :  { %v146_v59 = vpop.f32.mrf.mxu2 }
  0xff   :  { %v1268_v63 = vpop.eup %1267 }
 0x100   :  { %v1270_v0 = vpop.eup %1269  ;;  %v153_v1 = vadd.f32 1.0, %v1268_v63 }
 0x101   :  { %v173_v13 = vadd.f32 1.0, %v1270_v0  ;;  %v189_v0 = vadd.f32 %v1872_v56, %v146_v59 }
 0x102   :  { %1271 = vrcp.f32 %v153_v1  ;;  %v165_v51 = vand.u32 2147483648, %v153_v1  ;;  %v163_v58 = vand.u32 2147483647, %v153_v1  ;;  %vm159_vm1 = vweird.f32 %v153_v1 }
 0x103   :  { %1273 = vrcp.f32 %v173_v13  ;;  %vm179_vm5 = vweird.f32 %v173_v13 }
 0x104   :  { %v166_v62 = vor.u32 1.1754944e-38, %v165_v51  ;;  %vm164_vm3 = vcmp.eq.f32.partialorder %v163_v58, 8.507059e+37  ;;  %v185_v51 = vand.u32 2147483648, %v173_v13 }
 0x108   :  { %v1272_v26 = vpop.eup %1271 }
 0x109   :  { %v1274_v52 = vpop.eup %1273  ;;  %v155_v53 = vmul.f32 %v1272_v26, %v153_v1  ;;  %vm160_vm0 = vweird.f32 %v1272_v26  ;;  %v183_v1 = vand.u32 2147483647, %v173_v13 }
 0x10a   :  { %v175_v49 = vmul.f32 %v1274_v52, %v173_v13  ;;  %vm161_vm2 = vmor %vm159_vm1, %vm160_vm0  ;;  %vm180_vm4 = vweird.f32 %v1274_v52 }
 0x10b   :  { %v156_v50 = vsub.f32 1.0, %v155_v53  ;;  %v88_v53 = vld [vmem:[%s2646_s0 + $0x10] sm:$0xff]  ;;  %vm181_vm6 = vmor %vm179_vm5, %vm180_vm4  ;;  %vm184_vm7 = vcmp.eq.f32.partialorder %v183_v1, 8.507059e+37  ;;  %v2674_v1 = vld [vmem:[#allocation8_spill] sm:$0xff] }
 0x10c   :  { %v176_v61 = vsub.f32 1.0, %v175_v49 }
 0x10d   :  { %v157_v57 = vmul.f32 %v1272_v26, %v156_v50  ;;  %v1232_v50 = vld [vmem:[%s2642_s1 + $0x18] sm:$0xff] }
 0x10e   :  { %v177_v46 = vmul.f32 %v1274_v52, %v176_v61  ;;  %507 = vperm.xlu1 %1264, %v1232_v50  }
 0x10f   :  { %v158_v60 = vadd.f32 %v1272_v26, %v157_v57 }
 0x110   :  { %v178_v49 = vadd.f32 %v1274_v52, %v177_v46  ;;  %v224_v46 = vpop.permute.xlu0 %223 }
 0x111   :  { %v162_v63 = vsel %vm161_vm2, %v1272_v26, %v158_v60  ;;  %v1256_v26 = vld [vmem:[%s2642_s1 + $0x38] sm:$0xff]  ;;  %v186_v60 = vor.u32 1.1754944e-38, %v185_v51  ;;  %v2673_v51 = vld [vmem:[#allocation4_spill] sm:$0xff] }
 0x112   :  { %v167_v47 = vsel %vm164_vm3, %v166_v62, %v162_v63  ;;  %v182_v58 = vsel %vm181_vm6, %v1274_v52, %v178_v49  ;;  %v2672_v49 = vld [vmem:[#allocation3_spill] sm:$0xff] }
 0x113   :  { %v190_v55 = vmul.f32 %v189_v0, %v167_v47  ;;  %v187_v61 = vsel %vm184_vm7, %v186_v60, %v182_v58  ;;  %v2676_v58 = vld [vmem:[#allocation7_spill] sm:$0xff] }
 0x115   :  { %v191_v57 = vadd.f32 %v190_v55, %v88_v53 }
 0x116   :  { %1075 = vperm.xlu1 %1264, %v1256_v26   ;;  %v2675_v26 = vld [vmem:[#allocation6_spill] sm:$0xff] }
 0x117   :  { %1275 = vtanh.f32 %v191_v57 }
 0x11d   :  { %v1276_v59 = vpop.eup %1275 }
 0x11e   :  { %v193_v47 = vsub.f32 %v1801_v54, %v1276_v59 }
 0x120   :  { %v194_v62 = vmul.f32 %v193_v47, %v187_v61 }
 0x122   :  { %v195_v63 = vadd.f32 %v1276_v59, %v194_v62  ;;  %v1222_v59 = vld [vmem:[%s2646_s0 + $0x20] sm:$0xff]  ;;  %v1221_v62 = vld [vmem:[%s2646_s0 + $0x18] sm:$0xff] }
 0x124   :  { %v197_v0 = vrot.slane %v195_v63, 1  ;;  %v198_v53 = vrot.slane %v195_v63, 2  ;;  %v199_v50 = vrot.slane %v195_v63, 3  ;;  %211 = vst [vmem:[%s2647_s5] sm:$0x1] %v195_v63  ;;  %v200_v13 = vrot.slane %v195_v63, 4 }
 0x125   :  { %v1888_v55 = vmul.f32 %v224_v46, %v195_v63  ;;  %v201_v52 = vrot.slane %v195_v63, 5  ;;  %v202_v54 = vrot.slane %v195_v63, 6  ;;  %v203_v57 = vrot.slane %v195_v63, 7 }
 0x126   :  { %212 = vst [vmem:[%s2647_s5 + $0x8] sm:$0x1] %v197_v0 }
 0x127   :  { %213 = vst [vmem:[%s2647_s5 + $0x10] sm:$0x1] %v198_v53  ;;  %247 = vmatmul.f32.vlgmr.msra.gmra.mxu3 %v1888_v55  ;;  %267 = vmatmul.f32.vlgmr.msrb.gmra.mxu0 %v1888_v55 }
 0x128   :  { %214 = vst [vmem:[%s2647_s5 + $0x18] sm:$0x1] %v199_v50  ;;  %287 = vmatmul.f32.vlgmr.msrb.gmra.mxu1 %v1888_v55  ;;  %555 = vmatpush.msra.mxu3 %v1443_v4 }
 0x129   :  { %215 = vst [vmem:[%s2647_s5 + $0x20] sm:$0x1] %v200_v13  ;;  %657 = vmatpush.msrb.mxu0 %v1433_v2  ;;  %677 = vmatpush.msrb.mxu1 %v1438_v3 }
 0x12a   :  { %216 = vst [vmem:[%s2647_s5 + $0x28] sm:$0x1] %v201_v52  ;;  %556 = vmatpush.msra.mxu3 %v1460_v7 }
 0x12b   :  { %217 = vst [vmem:[%s2647_s5 + $0x30] sm:$0x1] %v202_v54  ;;  %658 = vmatpush.msrb.mxu0 %v1450_v5  ;;  %678 = vmatpush.msrb.mxu1 %v1455_v6 }
 0x12c   :  { %218 = vst [vmem:[%s2647_s5 + $0x38] sm:$0x1] %v203_v57  ;;  %557 = vmatpush.msra.mxu3 %v1479_v10 }
 0x12d   :  { %659 = vmatpush.msrb.mxu0 %v1466_v8  ;;  %679 = vmatpush.msrb.mxu1 %v1471_v9 }
 0x12e   :  { %558 = vmatpush.msra.mxu3 %v1501_v14 }
 0x12f   :  { %660 = vmatpush.msrb.mxu0 %v1485_v11  ;;  %680 = vmatpush.msrb.mxu1 %v1490_v12 }
 0x130   :  { %559 = vmatpush.msra.mxu3 %v1520_v17 }
 0x131   :  { %661 = vmatpush.msrb.mxu0 %v1507_v15  ;;  %681 = vmatpush.msrb.mxu1 %v1512_v16 }
 0x132   :  { %560 = vmatpush.msra.mxu3 %v1538_v20 }
 0x133   :  { %662 = vmatpush.msrb.mxu0 %v1526_v18  ;;  %682 = vmatpush.msrb.mxu1 %v1531_v19 }
 0x134   :  { %561 = vmatpush.msra.mxu3 %v1557_v23 }
 0x135   :  { %663 = vmatpush.msrb.mxu0 %v1544_v21  ;;  %683 = vmatpush.msrb.mxu1 %v1549_v22 }
 0x136   :  { %562 = vmatpush.msra.mxu3 %v1579_v27 }
 0x137   :  { %664 = vmatpush.msrb.mxu0 %v1563_v24  ;;  %684 = vmatpush.msrb.mxu1 %v1568_v25 }
 0x138   :  { %563 = vmatpush.msra.mxu3 %v1598_v30 }
 0x139   :  { %665 = vmatpush.msrb.mxu0 %v1585_v28  ;;  %685 = vmatpush.msrb.mxu1 %v1590_v29 }
 0x13a   :  { %564 = vmatpush.msra.mxu3 %v1616_v33 }
 0x13b   :  { %666 = vmatpush.msrb.mxu0 %v1604_v31  ;;  %686 = vmatpush.msrb.mxu1 %v1609_v32 }
 0x13c   :  { %565 = vmatpush.msra.mxu3 %v1635_v36 }
 0x13d   :  { %667 = vmatpush.msrb.mxu0 %v1622_v34  ;;  %687 = vmatpush.msrb.mxu1 %v1627_v35 }
 0x13e   :  { %566 = vmatpush.msra.mxu3 %v1654_v39 }
 0x13f   :  { %668 = vmatpush.msrb.mxu0 %v1641_v37  ;;  %688 = vmatpush.msrb.mxu1 %v1646_v38 }
 0x140   :  { %567 = vmatpush.msra.mxu3 %v1673_v42 }
 0x141   :  { %669 = vmatpush.msrb.mxu0 %v1660_v40  ;;  %689 = vmatpush.msrb.mxu1 %v1665_v41 }
 0x142   :  { %568 = vmatpush.msra.mxu3 %v1692_v45 }
 0x143   :  { %670 = vmatpush.msrb.mxu0 %v1679_v43  ;;  %690 = vmatpush.msrb.mxu1 %v1684_v44 }
 0x144   :  { %569 = vmatpush.msra.mxu3 %v1711_v48 }
 0x145   :  { %671 = vmatpush.msrb.mxu0 %v2672_v49  ;;  %691 = vmatpush.msrb.mxu1 %v2673_v51 }
 0x146   :  { %570 = vmatpush.msra.mxu3 %v2674_v1 }
 0x147   :  { %672 = vmatpush.msrb.mxu0 %v2675_v26  ;;  %692 = vmatpush.msrb.mxu1 %v2676_v58 }
 0x1a4   :  { %v268_v60 = vpop.f32.mrf.mxu0 }
 0x1a5   :  { %v311_v47 = vadd.f32 %v1222_v59, %v268_v60  ;;  %v288_v51 = vpop.f32.mrf.mxu1 }
 0x1a7   :  { %v1225_v61 = vmul.f32 -1.442695, %v311_v47 }
 0x1a9   :  { %1277 = vpow2.f32 %v1225_v61 }
 0x1aa   :  { %v248_v63 = vpop.f32.mrf.mxu3 }
 0x1ab   :  { %v291_v46 = vadd.f32 %v1221_v62, %v248_v63 }
 0x1ad   :  { %v1224_v0 = vmul.f32 -1.442695, %v291_v46  ;;  %v331_v46 = vadd.f32 %v1872_v56, %v288_v51 }
 0x1af   :  { %1279 = vpow2.f32 %v1224_v0  ;;  %v1278_v53 = vpop.eup %1277 }
 0x1b0   :  { %v315_v13 = vadd.f32 1.0, %v1278_v53  ;;  %v1223_v53 = vld [vmem:[%s2646_s0 + $0x28] sm:$0xff] }
 0x1b2   :  { %vm321_vm13 = vweird.f32 %v315_v13 }
 0x1b5   :  { %v1280_v50 = vpop.eup %1279 }
 0x1b6   :  { %v295_v52 = vadd.f32 1.0, %v1280_v50 }
 0x1b8   :  { %1281 = vrcp.f32 %v295_v52  ;;  %v307_v47 = vand.u32 2147483648, %v295_v52  ;;  %v305_v1 = vand.u32 2147483647, %v295_v52  ;;  %vm301_vm9 = vweird.f32 %v295_v52 }
 0x1b9   :  { %1283 = vrcp.f32 %v315_v13 }
 0x1ba   :  { %v308_v63 = vor.u32 1.1754944e-38, %v307_v47  ;;  %vm306_vm11 = vcmp.eq.f32.partialorder %v305_v1, 8.507059e+37 }
 0x1be   :  { %v1282_v54 = vpop.eup %1281 }
 0x1bf   :  { %v1284_v57 = vpop.eup %1283  ;;  %v297_v58 = vmul.f32 %v1282_v54, %v295_v52  ;;  %vm302_vm8 = vweird.f32 %v1282_v54  ;;  %v325_v52 = vand.u32 2147483647, %v315_v13 }
 0x1c0   :  { %v317_v60 = vmul.f32 %v1284_v57, %v315_v13  ;;  %vm303_vm10 = vmor %vm301_vm9, %vm302_vm8  ;;  %vm322_vm12 = vweird.f32 %v1284_v57 }
 0x1c1   :  { %v298_v59 = vsub.f32 1.0, %v297_v58  ;;  %vm323_vm14 = vmor %vm321_vm13, %vm322_vm12  ;;  %vm326_vm15 = vcmp.eq.f32.partialorder %v325_v52, 8.507059e+37 }
 0x1c2   :  { %v318_v61 = vsub.f32 1.0, %v317_v60 }
 0x1c3   :  { %v299_v26 = vmul.f32 %v1282_v54, %v298_v59 }
 0x1c4   :  { %v319_v49 = vmul.f32 %v1284_v57, %v318_v61 }
 0x1c5   :  { %v300_v62 = vadd.f32 %v1282_v54, %v299_v26  ;;  %v327_v26 = vand.u32 2147483648, %v315_v13 }
 0x1c6   :  { %v320_v48 = vadd.f32 %v1284_v57, %v319_v49  ;;  %v366_v49 = vpop.permute.xlu1 %365 }
 0x1c7   :  { %v304_v0 = vsel %vm303_vm10, %v1282_v54, %v300_v62  ;;  %v328_v51 = vor.u32 1.1754944e-38, %v327_v26 }
 0x1c8   :  { %v309_v58 = vsel %vm306_vm11, %v308_v63, %v304_v0  ;;  %v324_v60 = vsel %vm323_vm14, %v1284_v57, %v320_v48 }
 0x1c9   :  { %v332_v50 = vmul.f32 %v331_v46, %v309_v58  ;;  %v329_v54 = vsel %vm326_vm15, %v328_v51, %v324_v60 }
 0x1cb   :  { %v333_v59 = vadd.f32 %v1223_v53, %v332_v50 }
 0x1cd   :  { %1285 = vtanh.f32 %v333_v59 }
 0x1d3   :  { %v1286_v47 = vpop.eup %1285 }
 0x1d4   :  { %v335_v1 = vsub.f32 %v1888_v55, %v1286_v47 }
 0x1d6   :  { %v336_v62 = vmul.f32 %v335_v1, %v329_v54 }
 0x1d8   :  { %v337_v56 = vadd.f32 %v1286_v47, %v336_v62  ;;  %v508_v47 = vpop.permute.xlu1 %507 }
 0x1da   :  { %v339_v63 = vrot.slane %v337_v56, 1  ;;  %v340_v46 = vrot.slane %v337_v56, 2  ;;  %v341_v61 = vrot.slane %v337_v56, 3  ;;  %353 = vst [vmem:[%s2647_s5 + $0x1] sm:$0x1] %v337_v56  ;;  %v342_v0 = vrot.slane %v337_v56, 4 }
 0x1db   :  { %v1976_v13 = vmul.f32 %v366_v49, %v337_v56  ;;  %v343_v48 = vrot.slane %v337_v56, 5  ;;  %v344_v55 = vrot.slane %v337_v56, 6  ;;  %v345_v57 = vrot.slane %v337_v56, 7 }
 0x1dc   :  { %354 = vst [vmem:[%s2647_s5 + $0x9] sm:$0x1] %v339_v63 }
 0x1dd   :  { %355 = vst [vmem:[%s2647_s5 + $0x11] sm:$0x1] %v340_v46  ;;  %389 = vmatmul.f32.vlgmr.msrb.gmra.mxu2 %v1976_v13  ;;  %409 = vmatmul.f32.vlgmr.msrb.gmra.mxu3 %v1976_v13 }
 0x1de   :  { %356 = vst [vmem:[%s2647_s5 + $0x19] sm:$0x1] %v341_v61  ;;  %429 = vmatmul.f32.vlgmr.msra.gmra.mxu0 %v1976_v13  ;;  %697 = vmatpush.msrb.mxu2 %v1443_v4  ;;  %v2679_v4 = vld [vmem:[#allocation4_spill] sm:$0xff] }
 0x1df   :  { %357 = vst [vmem:[%s2647_s5 + $0x21] sm:$0x1] %v342_v0  ;;  %799 = vmatpush.msrb.mxu3 %v1433_v2  ;;  %819 = vmatpush.msra.mxu0 %v1438_v3  ;;  %v2677_v2 = vld [vmem:[#allocation5_spill] sm:$0xff]  ;;  %v2678_v3 = vld [vmem:[#allocation3_spill] sm:$0xff]  ;;  %v2087_v0 = vld [vmem:[%s2643_s3 + $0x178] sm:$0xff] }
 0x1e0   :  { %358 = vst [vmem:[%s2647_s5 + $0x29] sm:$0x1] %v343_v48  ;;  %698 = vmatpush.msrb.mxu2 %v1460_v7  ;;  %v2682_v7 = vld [vmem:[#allocation7_spill] sm:$0xff]  ;;  %v2102_v48 = vld [vmem:[%s2643_s3 + $0x170] sm:$0xff] }
 0x1e1   :  { %359 = vst [vmem:[%s2647_s5 + $0x31] sm:$0x1] %v344_v55  ;;  %800 = vmatpush.msrb.mxu3 %v1450_v5  ;;  %820 = vmatpush.msra.mxu0 %v1455_v6  ;;  %v2680_v5 = vld [vmem:[#allocation8_spill] sm:$0xff]  ;;  %v2681_v6 = vld [vmem:[#allocation6_spill] sm:$0xff]  ;;  %v2111_v55 = vld [vmem:[%s2643_s3 + $0x160] sm:$0xff] }
 0x1e2   :  { %360 = vst [vmem:[%s2647_s5 + $0x39] sm:$0x1] %v345_v57  ;;  %699 = vmatpush.msrb.mxu2 %v1479_v10  ;;  %v2120_v57 = vld [vmem:[%s2643_s3 + $0x150] sm:$0xff] }
 0x1e3   :  { %801 = vmatpush.msrb.mxu3 %v1466_v8  ;;  %821 = vmatpush.msra.mxu0 %v1471_v9  ;;  %v1227_v8 = vld [vmem:[%s2646_s0 + $0x30] sm:$0xff]  ;;  %v1228_v9 = vld [vmem:[%s2646_s0 + $0x38] sm:$0xff] }
 0x1e4   :  { %700 = vmatpush.msrb.mxu2 %v1501_v14 }
 0x1e5   :  { %802 = vmatpush.msrb.mxu3 %v1485_v11  ;;  %822 = vmatpush.msra.mxu0 %v1490_v12 }
 0x1e6   :  { %701 = vmatpush.msrb.mxu2 %v1520_v17 }
 0x1e7   :  { %803 = vmatpush.msrb.mxu3 %v1507_v15  ;;  %823 = vmatpush.msra.mxu0 %v1512_v16 }
 0x1e8   :  { %702 = vmatpush.msrb.mxu2 %v1538_v20 }
 0x1e9   :  { %804 = vmatpush.msrb.mxu3 %v1526_v18  ;;  %824 = vmatpush.msra.mxu0 %v1531_v19 }
 0x1ea   :  { %703 = vmatpush.msrb.mxu2 %v1557_v23 }
 0x1eb   :  { %805 = vmatpush.msrb.mxu3 %v1544_v21  ;;  %825 = vmatpush.msra.mxu0 %v1549_v22 }
 0x1ec   :  { %704 = vmatpush.msrb.mxu2 %v1579_v27 }
 0x1ed   :  { %806 = vmatpush.msrb.mxu3 %v1563_v24  ;;  %826 = vmatpush.msra.mxu0 %v1568_v25 }
 0x1ee   :  { %705 = vmatpush.msrb.mxu2 %v1598_v30 }
 0x1ef   :  { %807 = vmatpush.msrb.mxu3 %v1585_v28  ;;  %827 = vmatpush.msra.mxu0 %v1590_v29  ;;  %v1238_v28 = vld [vmem:[%s2642_s1 + $0x20] sm:$0xff] }
 0x1f0   :  { %706 = vmatpush.msrb.mxu2 %v1616_v33  ;;  %649 = vperm.xlu2 %1265, %v1238_v28   ;;  %v2249_v28 = vld [vmem:[%s2643_s3 + $0xa8] sm:$0xff] }
 0x1f1   :  { %808 = vmatpush.msrb.mxu3 %v1604_v31  ;;  %828 = vmatpush.msra.mxu0 %v1609_v32 }
 0x1f2   :  { %707 = vmatpush.msrb.mxu2 %v1635_v36 }
 0x1f3   :  { %809 = vmatpush.msrb.mxu3 %v1622_v34  ;;  %829 = vmatpush.msra.mxu0 %v1627_v35  ;;  %v2683_v35 = vld [vmem:[#allocation9_spill] sm:$0xff] }
 0x1f4   :  { %708 = vmatpush.msrb.mxu2 %v1654_v39 }
 0x1f5   :  { %810 = vmatpush.msrb.mxu3 %v1641_v37  ;;  %830 = vmatpush.msra.mxu0 %v1646_v38  ;;  %v1229_v38 = vld [vmem:[%s2646_s0 + $0x40] sm:$0xff] }
 0x1f6   :  { %709 = vmatpush.msrb.mxu2 %v1673_v42 }
 0x1f7   :  { %811 = vmatpush.msrb.mxu3 %v1660_v40  ;;  %831 = vmatpush.msra.mxu0 %v1665_v41  ;;  %v1244_v40 = vld [vmem:[%s2642_s1 + $0x28] sm:$0xff] }
 0x1f8   :  { %710 = vmatpush.msrb.mxu2 %v1692_v45  ;;  %791 = vperm.xlu2 %1265, %v1244_v40   ;;  %v2315_v40 = vld [vmem:[%s2643_s3 + $0x58] sm:$0xff] }
 0x1f9   :  { %812 = vmatpush.msrb.mxu3 %v1679_v43  ;;  %832 = vmatpush.msra.mxu0 %v1684_v44 }
 0x1fa   :  { %711 = vmatpush.msrb.mxu2 %v2677_v2 }
 0x1fb   :  { %813 = vmatpush.msrb.mxu3 %v2678_v3  ;;  %833 = vmatpush.msra.mxu0 %v2679_v4  ;;  %v2126_v3 = vld [vmem:[%s2643_s3 + $0x158] sm:$0xff]  ;;  %v2135_v4 = vld [vmem:[%s2643_s3 + $0x148] sm:$0xff] }
 0x1fc   :  { %712 = vmatpush.msrb.mxu2 %v2680_v5 }
 0x1fd   :  { %814 = vmatpush.msrb.mxu3 %v2681_v6  ;;  %834 = vmatpush.msra.mxu0 %v2682_v7 }
 0x25b   :  { %v430_v31 = vpop.f32.mrf.mxu0 }
 0x25c   :  { %v473_v36 = vadd.f32 %v2683_v35, %v430_v31  ;;  %v2267_v31 = vld [vmem:[%s2643_s3 + $0x90] sm:$0xff] }
 0x260   :  { %v390_v10 = vpop.f32.mrf.mxu2  ;;  %v410_v11 = vpop.f32.mrf.mxu3 }
 0x261   :  { %v433_v12 = vadd.f32 %v1227_v8, %v390_v10  ;;  %v453_v14 = vadd.f32 %v1228_v9, %v410_v11  ;;  %v2141_v8 = vld [vmem:[%s2643_s3 + $0x138] sm:$0xff]  ;;  %v2147_v9 = vld [vmem:[%s2643_s3 + $0x140] sm:$0xff]  ;;  %v2153_v10 = vld [vmem:[%s2643_s3 + $0x130] sm:$0xff] }
 0x262   :  { %v2159_v11 = vld [vmem:[%s2643_s3 + $0x120] sm:$0xff] }
 0x263   :  { %v1230_v15 = vmul.f32 -1.442695, %v433_v12  ;;  %v1231_v16 = vmul.f32 -1.442695, %v453_v14  ;;  %v2165_v12 = vld [vmem:[%s2643_s3 + $0x128] sm:$0xff]  ;;  %v2171_v14 = vld [vmem:[%s2643_s3 + $0x118] sm:$0xff] }
 0x265   :  { %1287 = vpow2.f32 %v1230_v15  ;;  %v2177_v15 = vld [vmem:[%s2643_s3 + $0x108] sm:$0xff] }
 0x266   :  { %1289 = vpow2.f32 %v1231_v16  ;;  %v2183_v16 = vld [vmem:[%s2643_s3 + $0x110] sm:$0xff] }
 0x26b   :  { %v1288_v17 = vpop.eup %1287 }
 0x26c   :  { %v1290_v18 = vpop.eup %1289  ;;  %v437_v19 = vadd.f32 1.0, %v1288_v17  ;;  %v2189_v17 = vld [vmem:[%s2643_s3 + $0x100] sm:$0xff] }
 0x26d   :  { %v457_v20 = vadd.f32 1.0, %v1290_v18  ;;  %v2195_v18 = vld [vmem:[%s2643_s3 + $0xf0] sm:$0xff] }
 0x26e   :  { %1291 = vrcp.f32 %v437_v19  ;;  %v449_v25 = vand.u32 2147483648, %v437_v19  ;;  %v447_v30 = vand.u32 2147483647, %v437_v19  ;;  %vm443_vm1 = vweird.f32 %v437_v19 }
 0x26f   :  { %1293 = vrcp.f32 %v457_v20  ;;  %v469_v45 = vand.u32 2147483648, %v457_v20  ;;  %vm463_vm5 = vweird.f32 %v457_v20  ;;  %v467_v56 = vand.u32 2147483647, %v457_v20 }
 0x270   :  { %v450_v33 = vor.u32 1.1754944e-38, %v449_v25  ;;  %vm448_vm3 = vcmp.eq.f32.partialorder %v447_v30, 8.507059e+37  ;;  %v2237_v25 = vld [vmem:[%s2643_s3 + $0xc8] sm:$0xff]  ;;  %v2261_v30 = vld [vmem:[%s2643_s3 + $0xa0] sm:$0xff] }
 0x271   :  { %v470_v50 = vor.u32 1.1754944e-38, %v469_v45  ;;  %vm468_vm7 = vcmp.eq.f32.partialorder %v467_v56, 8.507059e+37  ;;  %v2345_v45 = vld [vmem:[%s2643_s3 + $0x38] sm:$0xff] }
 0x272   :  { %v2352_v56 = vld [vmem:[%s2643_s3 + $0x18] sm:$0xff] }
 0x273   :  { %2684 = vst [vmem:[#allocation5_spill] sm:$0xff] %v2352_v56 }
 0x274   :  { %v1292_v21 = vpop.eup %1291 }
 0x275   :  { %v1294_v22 = vpop.eup %1293  ;;  %v439_v23 = vmul.f32 %v1292_v21, %v437_v19  ;;  %vm444_vm0 = vweird.f32 %v1292_v21  ;;  %v2201_v19 = vld [vmem:[%s2643_s3 + $0xf8] sm:$0xff] }
 0x276   :  { %v459_v27 = vmul.f32 %v1294_v22, %v457_v20  ;;  %vm445_vm2 = vmor %vm443_vm1, %vm444_vm0  ;;  %vm464_vm4 = vweird.f32 %v1294_v22  ;;  %v2207_v20 = vld [vmem:[%s2643_s3 + $0xe8] sm:$0xff] }
 0x277   :  { %v440_v24 = vsub.f32 1.0, %v439_v23  ;;  %vm465_vm6 = vmor %vm463_vm5, %vm464_vm4  ;;  %v2225_v23 = vld [vmem:[%s2643_s3 + $0xd0] sm:$0xff] }
 0x278   :  { %v460_v34 = vsub.f32 1.0, %v459_v27  ;;  %v2243_v27 = vld [vmem:[%s2643_s3 + $0xb8] sm:$0xff] }
 0x279   :  { %v441_v29 = vmul.f32 %v1292_v21, %v440_v24  ;;  %v2231_v24 = vld [vmem:[%s2643_s3 + $0xc0] sm:$0xff] }
 0x27a   :  { %v461_v42 = vmul.f32 %v1294_v22, %v460_v34  ;;  %v2285_v34 = vld [vmem:[%s2643_s3 + $0x78] sm:$0xff] }
 0x27b   :  { %v442_v32 = vadd.f32 %v1292_v21, %v441_v29  ;;  %v2255_v29 = vld [vmem:[%s2643_s3 + $0xb0] sm:$0xff] }
 0x27c   :  { %v462_v44 = vadd.f32 %v1294_v22, %v461_v42  ;;  %v2327_v42 = vld [vmem:[%s2643_s3 + $0x50] sm:$0xff] }
 0x27d   :  { %v446_v37 = vsel %vm445_vm2, %v1292_v21, %v442_v32  ;;  %v2213_v21 = vld [vmem:[%s2643_s3 + $0xd8] sm:$0xff] }
 0x27e   :  { %v451_v39 = vsel %vm448_vm3, %v450_v33, %v446_v37  ;;  %v466_v53 = vsel %vm465_vm6, %v1294_v22, %v462_v44  ;;  %v2219_v22 = vld [vmem:[%s2643_s3 + $0xe0] sm:$0xff]  ;;  %v2273_v32 = vld [vmem:[%s2643_s3 + $0x98] sm:$0xff]  ;;  %v2279_v33 = vld [vmem:[%s2643_s3 + $0x88] sm:$0xff] }
 0x27f   :  { %v474_v41 = vmul.f32 %v473_v36, %v451_v39  ;;  %v471_v26 = vsel %vm468_vm7, %v470_v50, %v466_v53  ;;  %v2291_v36 = vld [vmem:[%s2643_s3 + $0x80] sm:$0xff]  ;;  %v2297_v37 = vld [vmem:[%s2643_s3 + $0x70] sm:$0xff]  ;;  %v2309_v39 = vld [vmem:[%s2643_s3 + $0x68] sm:$0xff] }
 0x280   :  { %v2339_v44 = vld [vmem:[%s2643_s3 + $0x30] sm:$0xff]  ;;  %v2358_v53 = vld [vmem:[%s2643_s3 + $0x20] sm:$0xff] }
 0x281   :  { %v475_v43 = vadd.f32 %v1229_v38, %v474_v41  ;;  %v2303_v38 = vld [vmem:[%s2643_s3 + $0x60] sm:$0xff]  ;;  %v2321_v41 = vld [vmem:[%s2643_s3 + $0x48] sm:$0xff]  ;;  %2685 = vst [vmem:[#allocation3_spill] sm:$0xff] %v2358_v53 }
 0x283   :  { %1295 = vtanh.f32 %v475_v43  ;;  %v2333_v43 = vld [vmem:[%s2643_s3 + $0x40] sm:$0xff] }
 0x289   :  { %v1296_v58 = vpop.eup %1295 }
 0x28a   :  { %v477_v59 = vsub.f32 %v1976_v13, %v1296_v58  ;;  %v2096_v13 = vld [vmem:[%s2643_s3 + $0x168] sm:$0xff] }
 0x28c   :  { %v478_v52 = vmul.f32 %v477_v59, %v471_v26  ;;  %v1234_v26 = vld [vmem:[%s2646_s0 + $0x50] sm:$0xff] }
 0x28e   :  { %v479_v60 = vadd.f32 %v1296_v58, %v478_v52 }
 0x290   :  { %v481_v51 = vrot.slane %v479_v60, 1  ;;  %v482_v1 = vrot.slane %v479_v60, 2  ;;  %v483_v54 = vrot.slane %v479_v60, 3  ;;  %495 = vst [vmem:[%s2647_s5 + $0x2] sm:$0x1] %v479_v60  ;;  %v484_v62 = vrot.slane %v479_v60, 4 }
 0x291   :  { %v2070_v63 = vmul.f32 %v508_v47, %v479_v60  ;;  %v485_v46 = vrot.slane %v479_v60, 5  ;;  %v486_v61 = vrot.slane %v479_v60, 6  ;;  %v487_v49 = vrot.slane %v479_v60, 7 }
 0x292   :  { %496 = vst [vmem:[%s2647_s5 + $0xa] sm:$0x1] %v481_v51 }
 0x293   :  { %497 = vst [vmem:[%s2647_s5 + $0x12] sm:$0x1] %v482_v1  ;;  %531 = vmatmul.f32.vlgmr.msra.gmra.mxu1 %v2070_v63  ;;  %551 = vmatmul.f32.vlgmr.msra.gmra.mxu2 %v2070_v63 }
 0x294   :  { %498 = vst [vmem:[%s2647_s5 + $0x1a] sm:$0x1] %v483_v54  ;;  %571 = vmatmul.f32.vlgmr.msra.gmra.mxu3 %v2070_v63  ;;  %839 = vmatpush.msra.mxu1 %v2087_v0 }
 0x295   :  { %499 = vst [vmem:[%s2647_s5 + $0x22] sm:$0x1] %v484_v62  ;;  %941 = vmatpush.msra.mxu2 %v2096_v13  ;;  %961 = vmatpush.msra.mxu3 %v2102_v48 }
 0x296   :  { %500 = vst [vmem:[%s2647_s5 + $0x2a] sm:$0x1] %v485_v46  ;;  %840 = vmatpush.msra.mxu1 %v2111_v55 }
 0x297   :  { %501 = vst [vmem:[%s2647_s5 + $0x32] sm:$0x1] %v486_v61  ;;  %942 = vmatpush.msra.mxu2 %v2120_v57  ;;  %962 = vmatpush.msra.mxu3 %v2126_v3 }
 0x298   :  { %502 = vst [vmem:[%s2647_s5 + $0x3a] sm:$0x1] %v487_v49  ;;  %841 = vmatpush.msra.mxu1 %v2135_v4 }
 0x299   :  { %943 = vmatpush.msra.mxu2 %v2141_v8  ;;  %963 = vmatpush.msra.mxu3 %v2147_v9 }
 0x29a   :  { %842 = vmatpush.msra.mxu1 %v2153_v10 }
 0x29b   :  { %944 = vmatpush.msra.mxu2 %v2159_v11  ;;  %964 = vmatpush.msra.mxu3 %v2165_v12 }
 0x29c   :  { %843 = vmatpush.msra.mxu1 %v2171_v14 }
 0x29d   :  { %945 = vmatpush.msra.mxu2 %v2177_v15  ;;  %965 = vmatpush.msra.mxu3 %v2183_v16 }
 0x29e   :  { %844 = vmatpush.msra.mxu1 %v2189_v17 }
 0x29f   :  { %946 = vmatpush.msra.mxu2 %v2195_v18  ;;  %966 = vmatpush.msra.mxu3 %v2201_v19 }
 0x2a0   :  { %845 = vmatpush.msra.mxu1 %v2207_v20 }
 0x2a1   :  { %947 = vmatpush.msra.mxu2 %v2213_v21  ;;  %967 = vmatpush.msra.mxu3 %v2219_v22 }
 0x2a2   :  { %846 = vmatpush.msra.mxu1 %v2225_v23 }
 0x2a3   :  { %948 = vmatpush.msra.mxu2 %v2231_v24  ;;  %968 = vmatpush.msra.mxu3 %v2237_v25 }
 0x2a4   :  { %847 = vmatpush.msra.mxu1 %v2243_v27 }
 0x2a5   :  { %949 = vmatpush.msra.mxu2 %v2249_v28  ;;  %969 = vmatpush.msra.mxu3 %v2255_v29 }
 0x2a6   :  { %848 = vmatpush.msra.mxu1 %v2261_v30 }
 0x2a7   :  { %950 = vmatpush.msra.mxu2 %v2267_v31  ;;  %970 = vmatpush.msra.mxu3 %v2273_v32 }
 0x2a8   :  { %849 = vmatpush.msra.mxu1 %v2279_v33 }
 0x2a9   :  { %951 = vmatpush.msra.mxu2 %v2285_v34  ;;  %971 = vmatpush.msra.mxu3 %v2291_v36 }
 0x2aa   :  { %850 = vmatpush.msra.mxu1 %v2297_v37 }
 0x2ab   :  { %952 = vmatpush.msra.mxu2 %v2303_v38  ;;  %972 = vmatpush.msra.mxu3 %v2309_v39 }
 0x2ac   :  { %851 = vmatpush.msra.mxu1 %v2315_v40 }
 0x2ad   :  { %953 = vmatpush.msra.mxu2 %v2321_v41  ;;  %973 = vmatpush.msra.mxu3 %v2327_v42 }
 0x2ae   :  { %852 = vmatpush.msra.mxu1 %v2333_v43 }
 0x2af   :  { %954 = vmatpush.msra.mxu2 %v2339_v44  ;;  %974 = vmatpush.msra.mxu3 %v2345_v45 }
 0x2b0   :  { %853 = vmatpush.msra.mxu1 %v2677_v2  ;;  %v1233_v2 = vld [vmem:[%s2646_s0 + $0x48] sm:$0xff] }
 0x2b1   :  { %955 = vmatpush.msra.mxu2 %v2352_v56  ;;  %975 = vmatpush.msra.mxu3 %v2358_v53 }
 0x2b2   :  { %854 = vmatpush.msra.mxu1 %v2680_v5 }
 0x2b3   :  { %956 = vmatpush.msra.mxu2 %v2681_v6  ;;  %976 = vmatpush.msra.mxu3 %v2682_v7 }
 0x310   :  { %v532_v58 = vpop.f32.mrf.mxu1 }
 0x311   :  { %v575_v50 = vadd.f32 %v1233_v2, %v532_v58 }
 0x313   :  { %v1236_v59 = vmul.f32 -1.442695, %v575_v50 }
 0x315   :  { %1297 = vpow2.f32 %v1236_v59 }
 0x316   :  { %v552_v52 = vpop.f32.mrf.mxu2 }
 0x317   :  { %v595_v60 = vadd.f32 %v1234_v26, %v552_v52  ;;  %v572_v58 = vpop.f32.mrf.mxu3 }
 0x319   :  { %v1237_v47 = vmul.f32 -1.442695, %v595_v60 }
 0x31b   :  { %v1298_v5 = vpop.eup %1297  ;;  %1299 = vpow2.f32 %v1237_v47  ;;  %v615_v47 = vadd.f32 %v2683_v35, %v572_v58 }
 0x31c   :  { %v579_v6 = vadd.f32 1.0, %v1298_v5  ;;  %v1235_v5 = vld [vmem:[%s2646_s0 + $0x58] sm:$0xff] }
 0x31e   :  { %1301 = vrcp.f32 %v579_v6  ;;  %v591_v46 = vand.u32 2147483648, %v579_v6  ;;  %v589_v49 = vand.u32 2147483647, %v579_v6  ;;  %vm585_vm9 = vweird.f32 %v579_v6 }
 0x320   :  { %v592_v26 = vor.u32 1.1754944e-38, %v591_v46  ;;  %vm590_vm11 = vcmp.eq.f32.partialorder %v589_v49, 8.507059e+37 }
 0x321   :  { %v1300_v7 = vpop.eup %1299 }
 0x322   :  { %v599_v51 = vadd.f32 1.0, %v1300_v7 }
 0x324   :  { %v1302_v1 = vpop.eup %1301  ;;  %1303 = vrcp.f32 %v599_v51  ;;  %vm605_vm13 = vweird.f32 %v599_v51 }
 0x325   :  { %v581_v54 = vmul.f32 %v1302_v1, %v579_v6  ;;  %vm586_vm8 = vweird.f32 %v1302_v1  ;;  %v609_v6 = vand.u32 2147483647, %v599_v51 }
 0x326   :  { %vm587_vm10 = vmor %vm585_vm9, %vm586_vm8 }
 0x327   :  { %v582_v62 = vsub.f32 1.0, %v581_v54  ;;  %vm610_vm15 = vcmp.eq.f32.partialorder %v609_v6, 8.507059e+37 }
 0x329   :  { %v583_v61 = vmul.f32 %v1302_v1, %v582_v62 }
 0x32a   :  { %v1304_v2 = vpop.eup %1303 }
 0x32b   :  { %v601_v50 = vmul.f32 %v1304_v2, %v599_v51  ;;  %v584_v59 = vadd.f32 %v1302_v1, %v583_v61  ;;  %vm606_vm12 = vweird.f32 %v1304_v2  ;;  %v611_v61 = vand.u32 2147483648, %v599_v51 }
 0x32c   :  { %vm607_vm14 = vmor %vm605_vm13, %vm606_vm12 }
 0x32d   :  { %v602_v52 = vsub.f32 1.0, %v601_v50  ;;  %v588_v60 = vsel %vm587_vm10, %v1302_v1, %v584_v59  ;;  %v612_v49 = vor.u32 1.1754944e-38, %v611_v61  ;;  %v1241_v61 = vld [vmem:[%s2646_s0 + $0x70] sm:$0xff] }
 0x32e   :  { %v593_v7 = vsel %vm590_vm11, %v592_v26, %v588_v60 }
 0x32f   :  { %v616_v54 = vmul.f32 %v615_v47, %v593_v7  ;;  %v603_v62 = vmul.f32 %v1304_v2, %v602_v52 }
 0x331   :  { %v617_v53 = vadd.f32 %v1235_v5, %v616_v54  ;;  %v604_v56 = vadd.f32 %v1304_v2, %v603_v62  ;;  %v2688_v54 = vld [vmem:[#allocation9_spill] sm:$0xff] }
 0x333   :  { %1305 = vtanh.f32 %v617_v53  ;;  %v608_v46 = vsel %vm607_vm14, %v1304_v2, %v604_v56  ;;  %v650_v53 = vpop.permute.xlu2 %649 }
 0x334   :  { %v613_v50 = vsel %vm610_vm15, %v612_v49, %v608_v46 }
 0x339   :  { %v1306_v1 = vpop.eup %1305 }
 0x33a   :  { %v619_v58 = vsub.f32 %v2070_v63, %v1306_v1 }
 0x33c   :  { %v620_v59 = vmul.f32 %v619_v58, %v613_v50 }
 0x33e   :  { %v621_v35 = vadd.f32 %v1306_v1, %v620_v59 }
 0x340   :  { %v623_v26 = vrot.slane %v621_v35, 1  ;;  %v624_v60 = vrot.slane %v621_v35, 2  ;;  %v625_v52 = vrot.slane %v621_v35, 3  ;;  %637 = vst [vmem:[%s2647_s5 + $0x3] sm:$0x1] %v621_v35  ;;  %v626_v47 = vrot.slane %v621_v35, 4 }
 0x341   :  { %v2378_v51 = vmul.f32 %v650_v53, %v621_v35  ;;  %v627_v56 = vrot.slane %v621_v35, 5  ;;  %v628_v63 = vrot.slane %v621_v35, 6  ;;  %v629_v2 = vrot.slane %v621_v35, 7  ;;  %v2449_v35 = vld [vmem:[%s2643_s3 + $0x28] sm:$0xff] }
 0x342   :  { %638 = vst [vmem:[%s2647_s5 + $0xb] sm:$0x1] %v623_v26 }
 0x343   :  { %639 = vst [vmem:[%s2647_s5 + $0x13] sm:$0x1] %v624_v60  ;;  %673 = vmatmul.f32.vlgmr.msrb.gmra.mxu0 %v2378_v51  ;;  %693 = vmatmul.f32.vlgmr.msrb.gmra.mxu1 %v2378_v51 }
 0x344   :  { %640 = vst [vmem:[%s2647_s5 + $0x1b] sm:$0x1] %v625_v52  ;;  %713 = vmatmul.f32.vlgmr.msrb.gmra.mxu2 %v2378_v51  ;;  %981 = vmatpush.msrb.mxu0 %v2087_v0 }
 0x345   :  { %641 = vst [vmem:[%s2647_s5 + $0x23] sm:$0x1] %v626_v47  ;;  %1083 = vmatpush.msrb.mxu1 %v2096_v13  ;;  %1103 = vmatpush.msrb.mxu2 %v2102_v48  ;;  %v2686_v13 = vld [vmem:[#allocation5_spill] sm:$0xff]  ;;  %v2687_v48 = vld [vmem:[#allocation3_spill] sm:$0xff] }
 0x346   :  { %642 = vst [vmem:[%s2647_s5 + $0x2b] sm:$0x1] %v627_v56  ;;  %982 = vmatpush.msrb.mxu0 %v2111_v55 }
 0x347   :  { %643 = vst [vmem:[%s2647_s5 + $0x33] sm:$0x1] %v628_v63  ;;  %1084 = vmatpush.msrb.mxu1 %v2120_v57  ;;  %1104 = vmatpush.msrb.mxu2 %v2126_v3  ;;  %v2457_v57 = vld [vmem:[%s2643_s3 + $0x10] sm:$0xff]  ;;  %v1393_v3 = vld [vmem:[%s2643_s3] sm:$0xff] }
 0x348   :  { %644 = vst [vmem:[%s2647_s5 + $0x3b] sm:$0x1] %v629_v2  ;;  %983 = vmatpush.msrb.mxu0 %v2135_v4  ;;  %v792_v2 = vpop.permute.xlu2 %791 }
 0x349   :  { %1085 = vmatpush.msrb.mxu1 %v2141_v8  ;;  %1105 = vmatpush.msrb.mxu2 %v2147_v9  ;;  %v1394_v8 = vld [vmem:[%s2643_s3 + $0x8] sm:$0xff]  ;;  %v1239_v9 = vld [vmem:[%s2646_s0 + $0x60] sm:$0xff] }
 0x34a   :  { %984 = vmatpush.msrb.mxu0 %v2153_v10 }
 0x34b   :  { %1086 = vmatpush.msrb.mxu1 %v2159_v11  ;;  %1106 = vmatpush.msrb.mxu2 %v2165_v12  ;;  %v1240_v11 = vld [vmem:[%s2646_s0 + $0x68] sm:$0xff] }
 0x34c   :  { %985 = vmatpush.msrb.mxu0 %v2171_v14 }
 0x34d   :  { %1087 = vmatpush.msrb.mxu1 %v2177_v15  ;;  %1107 = vmatpush.msrb.mxu2 %v2183_v16 }
 0x34e   :  { %986 = vmatpush.msrb.mxu0 %v2189_v17 }
 0x34f   :  { %1088 = vmatpush.msrb.mxu1 %v2195_v18  ;;  %1108 = vmatpush.msrb.mxu2 %v2201_v19 }
 0x350   :  { %987 = vmatpush.msrb.mxu0 %v2207_v20 }
 0x351   :  { %1089 = vmatpush.msrb.mxu1 %v2213_v21  ;;  %1109 = vmatpush.msrb.mxu2 %v2219_v22 }
 0x352   :  { %988 = vmatpush.msrb.mxu0 %v2225_v23 }
 0x353   :  { %1090 = vmatpush.msrb.mxu1 %v2231_v24  ;;  %1110 = vmatpush.msrb.mxu2 %v2237_v25 }
 0x354   :  { %989 = vmatpush.msrb.mxu0 %v2243_v27 }
 0x355   :  { %1091 = vmatpush.msrb.mxu1 %v2249_v28  ;;  %1111 = vmatpush.msrb.mxu2 %v2255_v29 }
 0x356   :  { %990 = vmatpush.msrb.mxu0 %v2261_v30 }
 0x357   :  { %1092 = vmatpush.msrb.mxu1 %v2267_v31  ;;  %1112 = vmatpush.msrb.mxu2 %v2273_v32 }
 0x358   :  { %991 = vmatpush.msrb.mxu0 %v2279_v33 }
 0x359   :  { %1093 = vmatpush.msrb.mxu1 %v2285_v34  ;;  %1113 = vmatpush.msrb.mxu2 %v2291_v36 }
 0x35a   :  { %992 = vmatpush.msrb.mxu0 %v2297_v37 }
 0x35b   :  { %1094 = vmatpush.msrb.mxu1 %v2303_v38  ;;  %1114 = vmatpush.msrb.mxu2 %v2309_v39 }
 0x35c   :  { %993 = vmatpush.msrb.mxu0 %v2315_v40 }
 0x35d   :  { %1095 = vmatpush.msrb.mxu1 %v2321_v41  ;;  %1115 = vmatpush.msrb.mxu2 %v2327_v42 }
 0x35e   :  { %994 = vmatpush.msrb.mxu0 %v2333_v43 }
 0x35f   :  { %1096 = vmatpush.msrb.mxu1 %v2339_v44  ;;  %1116 = vmatpush.msrb.mxu2 %v2345_v45 }
 0x360   :  { %995 = vmatpush.msrb.mxu0 %v2449_v35 }
 0x361   :  { %1097 = vmatpush.msrb.mxu1 %v2686_v13  ;;  %1117 = vmatpush.msrb.mxu2 %v2687_v48 }
 0x362   :  { %996 = vmatpush.msrb.mxu0 %v2457_v57 }
 0x363   :  { %1098 = vmatpush.msrb.mxu1 %v1393_v3  ;;  %1118 = vmatpush.msrb.mxu2 %v1394_v8 }
 0x3c0   :  { %v674_v12 = vpop.f32.mrf.mxu0  ;;  %v694_v15 = vpop.f32.mrf.mxu1 }
 0x3c1   :  { %v717_v16 = vadd.f32 %v1239_v9, %v674_v12  ;;  %v737_v18 = vadd.f32 %v1240_v11, %v694_v15 }
 0x3c3   :  { %v1242_v19 = vmul.f32 -1.442695, %v717_v16  ;;  %v1243_v21 = vmul.f32 -1.442695, %v737_v18 }
 0x3c5   :  { %1307 = vpow2.f32 %v1242_v19 }
 0x3c6   :  { %1309 = vpow2.f32 %v1243_v21 }
 0x3c7   :  { %v714_v42 = vpop.f32.mrf.mxu2 }
 0x3c8   :  { %v757_v62 = vadd.f32 %v2688_v54, %v714_v42 }
 0x3cb   :  { %v1308_v22 = vpop.eup %1307 }
 0x3cc   :  { %v1310_v24 = vpop.eup %1309  ;;  %v721_v25 = vadd.f32 1.0, %v1308_v22 }
 0x3cd   :  { %v741_v28 = vadd.f32 1.0, %v1310_v24 }
 0x3ce   :  { %1311 = vrcp.f32 %v721_v25  ;;  %v733_v38 = vand.u32 2147483648, %v721_v25  ;;  %v731_v41 = vand.u32 2147483647, %v721_v25  ;;  %vm727_vm1 = vweird.f32 %v721_v25 }
 0x3cf   :  { %1313 = vrcp.f32 %v741_v28  ;;  %v753_v50 = vand.u32 2147483648, %v741_v28  ;;  %vm747_vm5 = vweird.f32 %v741_v28  ;;  %v751_v59 = vand.u32 2147483647, %v741_v28 }
 0x3d0   :  { %v734_v5 = vor.u32 1.1754944e-38, %v733_v38  ;;  %vm732_vm3 = vcmp.eq.f32.partialorder %v731_v41, 8.507059e+37 }
 0x3d1   :  { %v754_v52 = vor.u32 1.1754944e-38, %v753_v50  ;;  %vm752_vm7 = vcmp.eq.f32.partialorder %v751_v59, 8.507059e+37 }
 0x3d4   :  { %v1312_v29 = vpop.eup %1311 }
 0x3d5   :  { %v1314_v31 = vpop.eup %1313  ;;  %v723_v32 = vmul.f32 %v1312_v29, %v721_v25  ;;  %vm728_vm0 = vweird.f32 %v1312_v29 }
 0x3d6   :  { %v743_v36 = vmul.f32 %v1314_v31, %v741_v28  ;;  %vm729_vm2 = vmor %vm727_vm1, %vm728_vm0  ;;  %vm748_vm4 = vweird.f32 %v1314_v31  ;;  %v2531_v28 = vld [vmem:[%s2645_s4] ss:$0 sm:$0xff] }
 0x3d7   :  { %v724_v34 = vsub.f32 1.0, %v723_v32  ;;  %vm749_vm6 = vmor %vm747_vm5, %vm748_vm4  ;;  %v1247_v32 = vld [vmem:[%s2646_s0 + $0x88] sm:$0xff] }
 0x3d8   :  { %v744_v45 = vsub.f32 1.0, %v743_v36 }
 0x3d9   :  { %v725_v39 = vmul.f32 %v1312_v29, %v724_v34 }
 0x3da   :  { %v745_v1 = vmul.f32 %v1314_v31, %v744_v45 }
 0x3db   :  { %v726_v44 = vadd.f32 %v1312_v29, %v725_v39 }
 0x3dc   :  { %v746_v58 = vadd.f32 %v1314_v31, %v745_v1 }
 0x3dd   :  { %v730_v7 = vsel %vm729_vm2, %v1312_v29, %v726_v44 }
 0x3de   :  { %v735_v6 = vsel %vm732_vm3, %v734_v5, %v730_v7  ;;  %v750_v26 = vsel %vm749_vm6, %v1314_v31, %v746_v58 }
 0x3df   :  { %v758_v46 = vmul.f32 %v757_v62, %v735_v6  ;;  %v755_v47 = vsel %vm752_vm7, %v754_v52, %v750_v26 }
 0x3e1   :  { %v759_v49 = vadd.f32 %v1241_v61, %v758_v46  ;;  %v934_v46 = vpop.permute.xlu0 %933 }
 0x3e3   :  { %1315 = vtanh.f32 %v759_v49 }
 0x3e9   :  { %v1316_v60 = vpop.eup %1315 }
 0x3ea   :  { %v761_v53 = vsub.f32 %v2378_v51, %v1316_v60 }
 0x3ec   :  { %v762_v56 = vmul.f32 %v761_v53, %v755_v47  ;;  %v1251_v53 = vld [vmem:[%s2646_s0 + $0x90] sm:$0xff]  ;;  %v1252_v47 = vld [vmem:[%s2646_s0 + $0x98] sm:$0xff] }
 0x3ee   :  { %v763_v63 = vadd.f32 %v1316_v60, %v762_v56 }
 0x3f0   :  { %v765_v13 = vrot.slane %v763_v63, 1  ;;  %v766_v48 = vrot.slane %v763_v63, 2  ;;  %v767_v3 = vrot.slane %v763_v63, 3  ;;  %779 = vst [vmem:[%s2647_s5 + $0x4] sm:$0x1] %v763_v63  ;;  %v768_v8 = vrot.slane %v763_v63, 4 }
 0x3f1   :  { %v2480_v9 = vmul.f32 %v792_v2, %v763_v63  ;;  %v769_v11 = vrot.slane %v763_v63, 5  ;;  %v770_v51 = vrot.slane %v763_v63, 6  ;;  %v771_v12 = vrot.slane %v763_v63, 7 }
 0x3f2   :  { %780 = vst [vmem:[%s2647_s5 + $0xc] sm:$0x1] %v765_v13 }
 0x3f3   :  { %781 = vst [vmem:[%s2647_s5 + $0x14] sm:$0x1] %v766_v48  ;;  %815 = vmatmul.f32.vlgmr.msrb.gmra.mxu3 %v2480_v9  ;;  %835 = vmatmul.f32.vlgmr.msra.gmra.mxu0 %v2480_v9 }
 0x3f4   :  { %782 = vst [vmem:[%s2647_s5 + $0x1c] sm:$0x1] %v767_v3  ;;  %855 = vmatmul.f32.vlgmr.msra.gmra.mxu1 %v2480_v9  ;;  %1123 = vmatpush.msrb.mxu3 %v2087_v0  ;;  %v1246_v0 = vld [vmem:[%s2646_s0 + $0x80] sm:$0xff] }
 0x3f5   :  { %783 = vst [vmem:[%s2647_s5 + $0x24] sm:$0x1] %v768_v8 }
 0x3f6   :  { %784 = vst [vmem:[%s2647_s5 + $0x2c] sm:$0x1] %v769_v11  ;;  %1124 = vmatpush.msrb.mxu3 %v2111_v55 }
 0x3f7   :  { %785 = vst [vmem:[%s2647_s5 + $0x34] sm:$0x1] %v770_v51 }
 0x3f8   :  { %786 = vst [vmem:[%s2647_s5 + $0x3c] sm:$0x1] %v771_v12  ;;  %1125 = vmatpush.msrb.mxu3 %v2135_v4 }
 0x3fa   :  { %1126 = vmatpush.msrb.mxu3 %v2153_v10 }
 0x3fc   :  { %1127 = vmatpush.msrb.mxu3 %v2171_v14  ;;  %v1245_v14 = vld [vmem:[%s2646_s0 + $0x78] sm:$0xff] }
 0x3fe   :  { %1128 = vmatpush.msrb.mxu3 %v2189_v17 }
 0x400   :  { %1129 = vmatpush.msrb.mxu3 %v2207_v20 }
 0x402   :  { %1130 = vmatpush.msrb.mxu3 %v2225_v23 }
 0x404   :  { %1131 = vmatpush.msrb.mxu3 %v2243_v27 }
 0x406   :  { %1132 = vmatpush.msrb.mxu3 %v2261_v30 }
 0x408   :  { %1133 = vmatpush.msrb.mxu3 %v2279_v33 }
 0x40a   :  { %1134 = vmatpush.msrb.mxu3 %v2297_v37 }
 0x40c   :  { %1135 = vmatpush.msrb.mxu3 %v2315_v40 }
 0x40e   :  { %1136 = vmatpush.msrb.mxu3 %v2333_v43 }
 0x410   :  { %1137 = vmatpush.msrb.mxu3 %v2449_v35 }
 0x412   :  { %1138 = vmatpush.msrb.mxu3 %v2457_v57 }
 0x470   :  { %v836_v55 = vpop.f32.mrf.mxu0 }
 0x471   :  { %v879_v4 = vadd.f32 %v1246_v0, %v836_v55  ;;  %v856_v21 = vpop.f32.mrf.mxu1 }
 0x472   :  { %v899_v29 = vadd.f32 %v2531_v28, %v856_v21 }
 0x473   :  { %v1249_v10 = vmul.f32 -1.442695, %v879_v4 }
 0x475   :  { %1317 = vpow2.f32 %v1249_v10 }
 0x476   :  { %v816_v17 = vpop.f32.mrf.mxu3 }
 0x477   :  { %v859_v20 = vadd.f32 %v1245_v14, %v816_v17 }
 0x479   :  { %v1248_v23 = vmul.f32 -1.442695, %v859_v20 }
 0x47b   :  { %1319 = vpow2.f32 %v1248_v23  ;;  %v1318_v27 = vpop.eup %1317 }
 0x47c   :  { %v883_v33 = vadd.f32 1.0, %v1318_v27 }
 0x47e   :  { %v895_v42 = vand.u32 2147483648, %v883_v33  ;;  %vm889_vm13 = vweird.f32 %v883_v33  ;;  %v893_v44 = vand.u32 2147483647, %v883_v33 }
 0x480   :  { %v896_v7 = vor.u32 1.1754944e-38, %v895_v42  ;;  %vm894_vm15 = vcmp.eq.f32.partialorder %v893_v44, 8.507059e+37 }
 0x481   :  { %v1320_v30 = vpop.eup %1319 }
 0x482   :  { %v863_v37 = vadd.f32 1.0, %v1320_v30 }
 0x484   :  { %1321 = vrcp.f32 %v863_v37  ;;  %v875_v16 = vand.u32 2147483648, %v863_v37  ;;  %v873_v19 = vand.u32 2147483647, %v863_v37  ;;  %vm869_vm9 = vweird.f32 %v863_v37 }
 0x485   :  { %1323 = vrcp.f32 %v883_v33 }
 0x486   :  { %v876_v25 = vor.u32 1.1754944e-38, %v875_v16  ;;  %vm874_vm11 = vcmp.eq.f32.partialorder %v873_v19, 8.507059e+37 }
 0x48a   :  { %v1322_v40 = vpop.eup %1321 }
 0x48b   :  { %v1324_v43 = vpop.eup %1323  ;;  %v865_v35 = vmul.f32 %v1322_v40, %v863_v37  ;;  %vm870_vm8 = vweird.f32 %v1322_v40 }
 0x48c   :  { %v885_v15 = vmul.f32 %v1324_v43, %v883_v33  ;;  %vm871_vm10 = vmor %vm869_vm9, %vm870_vm8  ;;  %vm890_vm12 = vweird.f32 %v1324_v43 }
 0x48d   :  { %v866_v57 = vsub.f32 1.0, %v865_v35  ;;  %vm891_vm14 = vmor %vm889_vm13, %vm890_vm12 }
 0x48e   :  { %v886_v24 = vsub.f32 1.0, %v885_v15 }
 0x48f   :  { %v867_v18 = vmul.f32 %v1322_v40, %v866_v57 }
 0x490   :  { %v887_v38 = vmul.f32 %v1324_v43, %v886_v24 }
 0x491   :  { %v868_v22 = vadd.f32 %v1322_v40, %v867_v18 }
 0x492   :  { %v888_v41 = vadd.f32 %v1324_v43, %v887_v38 }
 0x493   :  { %v872_v31 = vsel %vm871_vm10, %v1322_v40, %v868_v22 }
 0x494   :  { %v877_v34 = vsel %vm874_vm11, %v876_v25, %v872_v31  ;;  %v892_v45 = vsel %vm891_vm14, %v1324_v43, %v888_v41  ;;  %v1253_v43 = vld [vmem:[%s2646_s0 + $0xa0] sm:$0xff] }
 0x495   :  { %v900_v36 = vmul.f32 %v899_v29, %v877_v34  ;;  %v897_v62 = vsel %vm894_vm15, %v896_v7, %v892_v45 }
 0x497   :  { %v901_v39 = vadd.f32 %v1247_v32, %v900_v36  ;;  %v1076_v36 = vpop.permute.xlu1 %1075 }
 0x499   :  { %1325 = vtanh.f32 %v901_v39 }
 0x49f   :  { %v1326_v5 = vpop.eup %1325 }
 0x4a0   :  { %v903_v54 = vsub.f32 %v2480_v9, %v1326_v5 }
 0x4a2   :  { %v904_v61 = vmul.f32 %v903_v54, %v897_v62  ;;  %v1257_v54 = vld [vmem:[%s2646_s0 + $0xa8] sm:$0xff] }
 0x4a4   :  { %v905_v6 = vadd.f32 %v1326_v5, %v904_v61 }
 0x4a6   :  { %v907_v1 = vrot.slane %v905_v6, 1  ;;  %v908_v49 = vrot.slane %v905_v6, 2  ;;  %v909_v58 = vrot.slane %v905_v6, 3  ;;  %921 = vst [vmem:[%s2647_s5 + $0x5] sm:$0x1] %v905_v6  ;;  %v910_v50 = vrot.slane %v905_v6, 4 }
 0x4a7   :  { %v2541_v59 = vmul.f32 %v934_v46, %v905_v6  ;;  %v911_v26 = vrot.slane %v905_v6, 5  ;;  %v912_v60 = vrot.slane %v905_v6, 6  ;;  %v913_v52 = vrot.slane %v905_v6, 7  ;;  %v1258_v46 = vld [vmem:[%s2646_s0 + $0xb0] sm:$0xff] }
 0x4a8   :  { %922 = vst [vmem:[%s2647_s5 + $0xd] sm:$0x1] %v907_v1 }
 0x4a9   :  { %923 = vst [vmem:[%s2647_s5 + $0x15] sm:$0x1] %v908_v49  ;;  %957 = vmatmul.f32.vlgmr.msra.gmra.mxu2 %v2541_v59  ;;  %977 = vmatmul.f32.vlgmr.msra.gmra.mxu3 %v2541_v59 }
 0x4aa   :  { %924 = vst [vmem:[%s2647_s5 + $0x1d] sm:$0x1] %v909_v58  ;;  %997 = vmatmul.f32.vlgmr.msrb.gmra.mxu0 %v2541_v59 }
 0x4ab   :  { %925 = vst [vmem:[%s2647_s5 + $0x25] sm:$0x1] %v910_v50 }
 0x4ac   :  { %926 = vst [vmem:[%s2647_s5 + $0x2d] sm:$0x1] %v911_v26 }
 0x4ad   :  { %927 = vst [vmem:[%s2647_s5 + $0x35] sm:$0x1] %v912_v60 }
 0x4ae   :  { %928 = vst [vmem:[%s2647_s5 + $0x3d] sm:$0x1] %v913_v52 }
 0x527   :  { %v998_v23 = vpop.f32.mrf.mxu0 }
 0x528   :  { %v1041_v37 = vadd.f32 %v2531_v28, %v998_v23 }
 0x52c   :  { %v958_v56 = vpop.f32.mrf.mxu2  ;;  %v978_v63 = vpop.f32.mrf.mxu3 }
 0x52d   :  { %v1001_v2 = vadd.f32 %v1251_v53, %v958_v56  ;;  %v1021_v13 = vadd.f32 %v1252_v47, %v978_v63 }
 0x52f   :  { %v1254_v48 = vmul.f32 -1.442695, %v1001_v2  ;;  %v1255_v3 = vmul.f32 -1.442695, %v1021_v13 }
 0x531   :  { %1327 = vpow2.f32 %v1254_v48 }
 0x532   :  { %1329 = vpow2.f32 %v1255_v3 }
 0x537   :  { %v1328_v8 = vpop.eup %1327 }
 0x538   :  { %v1330_v9 = vpop.eup %1329  ;;  %v1005_v11 = vadd.f32 1.0, %v1328_v8 }
 0x539   :  { %v1025_v51 = vadd.f32 1.0, %v1330_v9 }
 0x53a   :  { %1331 = vrcp.f32 %v1005_v11  ;;  %v1017_v10 = vand.u32 2147483648, %v1005_v11  ;;  %v1015_v20 = vand.u32 2147483647, %v1005_v11  ;;  %vm1011_vm1 = vweird.f32 %v1005_v11 }
 0x53b   :  { %1333 = vrcp.f32 %v1025_v51  ;;  %v1037_v19 = vand.u32 2147483648, %v1025_v51  ;;  %vm1031_vm5 = vweird.f32 %v1025_v51  ;;  %v1035_v21 = vand.u32 2147483647, %v1025_v51 }
 0x53c   :  { %v1018_v30 = vor.u32 1.1754944e-38, %v1017_v10  ;;  %vm1016_vm3 = vcmp.eq.f32.partialorder %v1015_v20, 8.507059e+37 }
 0x53d   :  { %v1038_v25 = vor.u32 1.1754944e-38, %v1037_v19  ;;  %vm1036_vm7 = vcmp.eq.f32.partialorder %v1035_v21, 8.507059e+37 }
 0x540   :  { %v1332_v12 = vpop.eup %1331 }
 0x541   :  { %v1334_v0 = vpop.eup %1333  ;;  %v1007_v55 = vmul.f32 %v1332_v12, %v1005_v11  ;;  %vm1012_vm0 = vweird.f32 %v1332_v12 }
 0x542   :  { %v1027_v14 = vmul.f32 %v1334_v0, %v1025_v51  ;;  %vm1013_vm2 = vmor %vm1011_vm1, %vm1012_vm0  ;;  %vm1032_vm4 = vweird.f32 %v1334_v0 }
 0x543   :  { %v1008_v4 = vsub.f32 1.0, %v1007_v55  ;;  %vm1033_vm6 = vmor %vm1031_vm5, %vm1032_vm4 }
 0x544   :  { %v1028_v33 = vsub.f32 1.0, %v1027_v14 }
 0x545   :  { %v1009_v17 = vmul.f32 %v1332_v12, %v1008_v4 }
 0x546   :  { %v1029_v15 = vmul.f32 %v1334_v0, %v1028_v33 }
 0x547   :  { %v1010_v27 = vadd.f32 %v1332_v12, %v1009_v17 }
 0x548   :  { %v1030_v18 = vadd.f32 %v1334_v0, %v1029_v15 }
 0x549   :  { %v1014_v40 = vsel %vm1013_vm2, %v1332_v12, %v1010_v27 }
 0x54a   :  { %v1019_v35 = vsel %vm1016_vm3, %v1018_v30, %v1014_v40  ;;  %v1034_v22 = vsel %vm1033_vm6, %v1334_v0, %v1030_v18  ;;  %v1259_v0 = vld [vmem:[%s2646_s0 + $0xb8] sm:$0xff] }
 0x54b   :  { %v1042_v57 = vmul.f32 %v1041_v37, %v1019_v35  ;;  %v1039_v31 = vsel %vm1036_vm7, %v1038_v25, %v1034_v22 }
 0x54d   :  { %v1043_v16 = vadd.f32 %v1253_v43, %v1042_v57 }
 0x54f   :  { %1335 = vtanh.f32 %v1043_v16 }
 0x555   :  { %v1336_v24 = vpop.eup %1335 }
 0x556   :  { %v1045_v29 = vsub.f32 %v2541_v59, %v1336_v24 }
 0x558   :  { %v1046_v32 = vmul.f32 %v1045_v29, %v1039_v31 }
 0x55a   :  { %v1047_v34 = vadd.f32 %v1336_v24, %v1046_v32 }
 0x55c   :  { %v1049_v38 = vrot.slane %v1047_v34, 1  ;;  %v1050_v39 = vrot.slane %v1047_v34, 2  ;;  %v1051_v41 = vrot.slane %v1047_v34, 3  ;;  %1063 = vst [vmem:[%s2647_s5 + $0x6] sm:$0x1] %v1047_v34  ;;  %v1052_v42 = vrot.slane %v1047_v34, 4 }
 0x55d   :  { %v2581_v44 = vmul.f32 %v1076_v36, %v1047_v34  ;;  %v1053_v45 = vrot.slane %v1047_v34, 5  ;;  %v1054_v5 = vrot.slane %v1047_v34, 6  ;;  %v1055_v7 = vrot.slane %v1047_v34, 7 }
 0x55e   :  { %1064 = vst [vmem:[%s2647_s5 + $0xe] sm:$0x1] %v1049_v38 }
 0x55f   :  { %1065 = vst [vmem:[%s2647_s5 + $0x16] sm:$0x1] %v1050_v39  ;;  %1099 = vmatmul.f32.vlgmr.msrb.gmra.mxu1 %v2581_v44  ;;  %1119 = vmatmul.f32.vlgmr.msrb.gmra.mxu2 %v2581_v44 }
 0x560   :  { %1066 = vst [vmem:[%s2647_s5 + $0x1e] sm:$0x1] %v1051_v41  ;;  %1139 = vmatmul.f32.vlgmr.msrb.gmra.mxu3 %v2581_v44 }
 0x561   :  { %1067 = vst [vmem:[%s2647_s5 + $0x26] sm:$0x1] %v1052_v42 }
 0x562   :  { %1068 = vst [vmem:[%s2647_s5 + $0x2e] sm:$0x1] %v1053_v45 }
 0x563   :  { %1069 = vst [vmem:[%s2647_s5 + $0x36] sm:$0x1] %v1054_v5 }
 0x564   :  { %1070 = vst [vmem:[%s2647_s5 + $0x3e] sm:$0x1] %v1055_v7 }
 0x5dc   :  { %v1100_v62 = vpop.f32.mrf.mxu1 }
 0x5dd   :  { %v1143_v61 = vadd.f32 %v1257_v54, %v1100_v62 }
 0x5df   :  { %v1260_v6 = vmul.f32 -1.442695, %v1143_v61 }
 0x5e1   :  { %1337 = vpow2.f32 %v1260_v6 }
 0x5e2   :  { %v1120_v1 = vpop.f32.mrf.mxu2 }
 0x5e3   :  { %v1163_v49 = vadd.f32 %v1258_v46, %v1120_v1  ;;  %v1140_v48 = vpop.f32.mrf.mxu3 }
 0x5e4   :  { %v1183_v12 = vadd.f32 %v2531_v28, %v1140_v48 }
 0x5e5   :  { %v1261_v58 = vmul.f32 -1.442695, %v1163_v49 }
 0x5e7   :  { %v1338_v50 = vpop.eup %1337  ;;  %1339 = vpow2.f32 %v1261_v58 }
 0x5e8   :  { %v1147_v59 = vadd.f32 1.0, %v1338_v50 }
 0x5ea   :  { %1341 = vrcp.f32 %v1147_v59  ;;  %v1159_v56 = vand.u32 2147483648, %v1147_v59  ;;  %v1157_v2 = vand.u32 2147483647, %v1147_v59  ;;  %vm1153_vm9 = vweird.f32 %v1147_v59 }
 0x5ec   :  { %v1160_v9 = vor.u32 1.1754944e-38, %v1159_v56  ;;  %vm1158_vm11 = vcmp.eq.f32.partialorder %v1157_v2, 8.507059e+37 }
 0x5ed   :  { %v1340_v26 = vpop.eup %1339 }
 0x5ee   :  { %v1167_v60 = vadd.f32 1.0, %v1340_v26 }
 0x5f0   :  { %v1342_v52 = vpop.eup %1341  ;;  %1343 = vrcp.f32 %v1167_v60  ;;  %v1179_v20 = vand.u32 2147483648, %v1167_v60  ;;  %vm1173_vm13 = vweird.f32 %v1167_v60  ;;  %v1177_v23 = vand.u32 2147483647, %v1167_v60 }
 0x5f1   :  { %v1149_v53 = vmul.f32 %v1342_v52, %v1147_v59  ;;  %vm1154_vm8 = vweird.f32 %v1342_v52 }
 0x5f2   :  { %vm1155_vm10 = vmor %vm1153_vm9, %vm1154_vm8  ;;  %v1180_v33 = vor.u32 1.1754944e-38, %v1179_v20  ;;  %vm1178_vm15 = vcmp.eq.f32.partialorder %v1177_v23, 8.507059e+37 }
 0x5f3   :  { %v1150_v47 = vsub.f32 1.0, %v1149_v53 }
 0x5f5   :  { %v1151_v63 = vmul.f32 %v1342_v52, %v1150_v47 }
 0x5f6   :  { %v1344_v13 = vpop.eup %1343 }
 0x5f7   :  { %v1169_v3 = vmul.f32 %v1344_v13, %v1167_v60  ;;  %v1152_v8 = vadd.f32 %v1342_v52, %v1151_v63  ;;  %vm1174_vm12 = vweird.f32 %v1344_v13 }
 0x5f8   :  { %vm1175_vm14 = vmor %vm1173_vm13, %vm1174_vm12 }
 0x5f9   :  { %v1170_v11 = vsub.f32 1.0, %v1169_v3  ;;  %v1156_v51 = vsel %vm1155_vm10, %v1342_v52, %v1152_v8 }
 0x5fa   :  { %v1161_v55 = vsel %vm1158_vm11, %v1160_v9, %v1156_v51 }
 0x5fb   :  { %v1184_v4 = vmul.f32 %v1183_v12, %v1161_v55  ;;  %v1171_v10 = vmul.f32 %v1344_v13, %v1170_v11 }
 0x5fd   :  { %v1185_v14 = vadd.f32 %v1259_v0, %v1184_v4  ;;  %v1172_v17 = vadd.f32 %v1344_v13, %v1171_v10 }
 0x5ff   :  { %1345 = vtanh.f32 %v1185_v14  ;;  %v1176_v27 = vsel %vm1175_vm14, %v1344_v13, %v1172_v17 }
 0x600   :  { %v1181_v37 = vsel %vm1178_vm15, %v1180_v33, %v1176_v27 }
 0x605   :  { %v1346_v30 = vpop.eup %1345 }
 0x606   :  { %v1187_v28 = vsub.f32 %v2581_v44, %v1346_v30 }
 0x608   :  { %v1188_v40 = vmul.f32 %v1187_v28, %v1181_v37 }
 0x60a   :  { %v1189_v43 = vadd.f32 %v1346_v30, %v1188_v40 }
 0x60c   :  { %v1191_v35 = vrot.slane %v1189_v43, 1  ;;  %v1192_v57 = vrot.slane %v1189_v43, 2  ;;  %v1193_v15 = vrot.slane %v1189_v43, 3  ;;  %1205 = vst [vmem:[%s2647_s5 + $0x7] sm:$0x1] %v1189_v43  ;;  %v1194_v16 = vrot.slane %v1189_v43, 4 }
 0x60d   :  { %v1195_v18 = vrot.slane %v1189_v43, 5  ;;  %v1196_v19 = vrot.slane %v1189_v43, 6  ;;  %v1197_v21 = vrot.slane %v1189_v43, 7 }
 0x60e   :  { %1206 = vst [vmem:[%s2647_s5 + $0xf] sm:$0x1] %v1191_v35 }
 0x60f   :  { %1207 = vst [vmem:[%s2647_s5 + $0x17] sm:$0x1] %v1192_v57 }
 0x610   :  { %1208 = vst [vmem:[%s2647_s5 + $0x1f] sm:$0x1] %v1193_v15 }
 0x611   :  { %1209 = vst [vmem:[%s2647_s5 + $0x27] sm:$0x1] %v1194_v16 }
 0x612   :  { %1210 = vst [vmem:[%s2647_s5 + $0x2f] sm:$0x1] %v1195_v18 }
 0x613   :  { %1211 = vst [vmem:[%s2647_s5 + $0x37] sm:$0x1] %v1196_v19 }
 0x614   :  { %1212 = vst [vmem:[%s2647_s5 + $0x3f] sm:$0x1] %v1197_v21 }

</bundles_post_ra>
